<compile_context>
chip_gen: v6e
topology: v6e:2x2x1
jax: 0.10.0
libtpu: 0.0.40
codegen_flags: <defaults>
</compile_context>

<pallas_src>
import jax
import jax.numpy as jnp
from jax.experimental import pallas as pl
from jax.experimental.pallas import tpu as pltpu

# Small, deterministic problem sizes (consistent with the module's forward).
VOCAB_SIZE = 50
W2V_DIM = 32      # embedding dim
HIDDEN_DIM = 32   # LSTM hidden dim
BATCH = 2
SEQ = 8


def lstm_fc_kernel(xg_ref, whh0_ref, w1_ref, b1_ref, fcw_ref, fcb_ref,
                   out_ref):
    """2-layer LSTM over time + Linear + sigmoid, all resident in VMEM.

    xg_ref : (T, B, 4H) precomputed layer-0 gate pre-activations
             (emb @ W_ih0^T + b_ih0 + b_hh0, gathered per token).
    whh0_ref: (H, 4H)   layer-0 recurrent weight (pre-transposed).
    w1_ref : (2H, 4H)   layer-1 packed [W_ih1^T ; W_hh1^T].
    b1_ref : (1, 4H)    layer-1 combined bias.
    fcw_ref: (1, H)     FC weight row.  fcb_ref: (1, 1) FC bias.
    """
    T, B, G = xg_ref.shape
    H = G // 4

    whh0 = whh0_ref[...]                                   # (H, 4H)
    w1 = w1_ref[...]                                       # (2H, 4H)
    b1b = jnp.broadcast_to(b1_ref[...], (B, G))            # hoisted broadcast
    fcw = fcw_ref[...]                                     # (1, H)
    fcb = fcb_ref[...]                                     # (1, 1)

    def gates(z, c):
        # Two full-vreg EUP passes instead of four 32-lane sliced ones.
        sig = jax.nn.sigmoid(z)                            # (B, 4H)
        th = jnp.tanh(z)                                   # (B, 4H)
        i = sig[:, 0 * H:1 * H]
        f = sig[:, 1 * H:2 * H]
        g = th[:, 2 * H:3 * H]
        o = sig[:, 3 * H:4 * H]
        c_new = f * c + i * g
        h_new = o * jnp.tanh(c_new)
        return h_new, c_new

    zeros = jnp.zeros((B, H), jnp.float32)
    h0, c0, h1, c1 = zeros, zeros, zeros, zeros

    # Fully unrolled static time loop (T is a compile-time constant).
    for t in range(T):
        # Layer 0: input projection is pre-folded into the embedding table,
        # only the recurrent matmul remains on the critical path.
        z0 = xg_ref[t] + jnp.dot(h0, whh0,
                                 preferred_element_type=jnp.float32)
        h0, c0 = gates(z0, c0)
        # TODO(synk): inter-layer dropout(0.5) is identity in eval mode.
        # Layer 1: single fused matmul over the packed (2H, 4H) weight.
        z1 = jnp.dot(jnp.concatenate([h0, h1], axis=1), w1,
                     preferred_element_type=jnp.float32) + b1b
        h1, c1 = gates(z1, c1)

    # output[:, -1] of the top LSTM layer == final h1.
    # TODO(synk): post-LSTM dropout(0.25) is identity in eval mode.
    # FC head as VPU multiply + lane reduction (avoids a degenerate N=1 MXU).
    logits = jnp.sum(h1 * fcw, axis=-1, keepdims=True) + fcb   # (B, 1)
    out_ref[...] = jax.nn.sigmoid(logits).astype(out_ref.dtype)


def init_params(key, d=W2V_DIM, h=HIDDEN_DIM, vocab=VOCAB_SIZE):
    ks = jax.random.split(key, 12)
    scale = 1.0 / jnp.sqrt(h)

    def u(k, shape):
        return jax.random.uniform(k, shape, jnp.float32, -scale, scale)

    emb = jax.random.normal(ks[0], (vocab, d), jnp.float32) * 0.1

    # PyTorch shapes: weight_ih_l0 (4H, D), weight_hh_l0 (4H, H), biases (4H,)
    wih0 = u(ks[1], (4 * h, d))
    whh0 = u(ks[2], (4 * h, h))
    bih0 = u(ks[3], (4 * h,))
    bhh0 = u(ks[4], (4 * h,))
    wih1 = u(ks[5], (4 * h, h))
    whh1 = u(ks[6], (4 * h, h))
    bih1 = u(ks[7], (4 * h,))
    bhh1 = u(ks[8], (4 * h,))
    fcw = u(ks[9], (1, h))        # nn.Linear(H, 1).weight
    fcb = u(ks[10], (1,))         # nn.Linear(H, 1).bias

    # Fold the layer-0 input projection + combined bias into the embedding:
    # gather of emb_proj yields the layer-0 gate pre-activation directly.
    emb_proj = emb @ wih0.T + (bih0 + bhh0)[None, :]       # (V, 4H)

    params = {
        # kept only for the pure-JAX reference
        "emb": emb,
        "wih0": wih0, "whh0_pt": whh0, "bih0": bih0, "bhh0": bhh0,
        "wih1": wih1, "whh1_pt": whh1, "bih1": bih1, "bhh1": bhh1,
        "fcw_pt": fcw, "fcb_pt": fcb,
        # kernel-side packed parameters
        "emb_proj": emb_proj,                              # (V, 4H)
        "whh0": whh0.T,                                    # (H, 4H)
        "w1": jnp.vstack([wih1.T, whh1.T]),                # (2H, 4H)
        "b1": (bih1 + bhh1).reshape(1, 4 * h),             # (1, 4H)
        "fcw": fcw,                                        # (1, H)
        "fcb": fcb.reshape(1, 1),                          # (1, 1)
    }
    return params


@jax.jit
def lstm_forward(token_ids, params):
    # Embedding gather (of the pre-projected table) stays in plain JAX glue.
    xg = params["emb_proj"][token_ids]                     # (B, T, 4H)
    xg = jnp.transpose(xg, (1, 0, 2))                      # (T, B, 4H)
    B = token_ids.shape[0]

    vmem = pl.BlockSpec(memory_space=pltpu.MemorySpace.VMEM)
    out = pl.pallas_call(
        lstm_fc_kernel,
        out_shape=jax.ShapeDtypeStruct((B, 1), jnp.float32),
        in_specs=[vmem] * 6,
        out_specs=vmem,
    )(xg, params["whh0"], params["w1"], params["b1"],
      params["fcw"], params["fcb"])
    return out


def lstm_forward_ref(token_ids, params):
    """Pure-JAX reference with PyTorch LSTM semantics (eval mode)."""
    h = HIDDEN_DIM
    x = params["emb"][token_ids]                           # (B, T, D)
    B, T, _ = x.shape

    def cell(x_t, hh, cc, wih, whh, bih, bhh):
        z = x_t @ wih.T + bih + hh @ whh.T + bhh
        i = jax.nn.sigmoid(z[:, 0 * h:1 * h])
        f = jax.nn.sigmoid(z[:, 1 * h:2 * h])
        g = jnp.tanh(z[:, 2 * h:3 * h])
        o = jax.nn.sigmoid(z[:, 3 * h:4 * h])
        c_new = f * cc + i * g
        return o * jnp.tanh(c_new), c_new

    z = jnp.zeros((B, h), jnp.float32)
    h0, c0, h1, c1 = z, z, z, z
    for t in range(T):
        h0, c0 = cell(x[:, t, :], h0, c0,
                      params["wih0"], params["whh0_pt"],
                      params["bih0"], params["bhh0"])
        h1, c1 = cell(h0, h1, c1,
                      params["wih1"], params["whh1_pt"],
                      params["bih1"], params["bhh1"])
    logits = h1 @ params["fcw_pt"].T + params["fcb_pt"]
    return jax.nn.sigmoid(logits)


if __name__ == "__main__":
    key = jax.random.PRNGKey(0)
    k_param, k_ids = jax.random.split(key)
    params = init_params(k_param)
    token_ids = jax.random.randint(k_ids, (BATCH, SEQ), 0, VOCAB_SIZE,
                                   dtype=jnp.int32)

    out = lstm_forward(token_ids, params)
    out = jax.block_until_ready(out)
    assert out.shape == (BATCH, 1)
    assert bool(jnp.all(jnp.isfinite(out)))
    assert bool(jnp.all((out > 0.0) & (out < 1.0)))

    ref = lstm_forward_ref(token_ids, params)
    assert bool(jnp.all(jnp.abs(out - ref) < 1e-3)), (out, ref)
    print("KERNEL_OK")
</pallas_src>

<mosaic_0001>
module attributes {stable_mosaic.version = 11 : i64} {
  func.func @lstm_fc_kernel(%arg0: memref<8x2x128xf32, #tpu.memory_space<vmem>>, %arg1: memref<32x128xf32, #tpu.memory_space<vmem>>, %arg2: memref<64x128xf32, #tpu.memory_space<vmem>>, %arg3: memref<1x128xf32, #tpu.memory_space<vmem>>, %arg4: memref<1x32xf32, #tpu.memory_space<vmem>>, %arg5: memref<1x1xf32, #tpu.memory_space<vmem>>, %arg6: memref<2x1xf32, #tpu.memory_space<vmem>>) attributes {dimension_semantics = [], scalar_prefetch = 0 : i64, scratch_operands = 0 : i64, tpu.core_type = #tpu.core_type<tc>} {
    %c0 = arith.constant 0 : index
    %c0_0 = arith.constant 0 : index
    %0 = vector.load %arg1[%c0, %c0_0] : memref<32x128xf32, #tpu.memory_space<vmem>>, vector<32x128xf32>
    %c0_1 = arith.constant 0 : index
    %c0_2 = arith.constant 0 : index
    %1 = vector.load %arg2[%c0_1, %c0_2] : memref<64x128xf32, #tpu.memory_space<vmem>>, vector<64x128xf32>
    %c0_3 = arith.constant 0 : index
    %c0_4 = arith.constant 0 : index
    %2 = vector.load %arg3[%c0_3, %c0_4] : memref<1x128xf32, #tpu.memory_space<vmem>>, vector<1x128xf32>
    %3 = vector.shape_cast %2 : vector<1x128xf32> to vector<1x128xf32>
    %4 = vector.broadcast %3 : vector<1x128xf32> to vector<2x128xf32>
    %c0_5 = arith.constant 0 : index
    %c0_6 = arith.constant 0 : index
    %5 = vector.load %arg4[%c0_5, %c0_6] : memref<1x32xf32, #tpu.memory_space<vmem>>, vector<1x32xf32>
    %c0_7 = arith.constant 0 : index
    %c0_8 = arith.constant 0 : index
    %6 = vector.load %arg5[%c0_7, %c0_8] : memref<1x1xf32, #tpu.memory_space<vmem>>, vector<1x1xf32>
    %cst = arith.constant 0.000000e+00 : f32
    %7 = vector.broadcast %cst : f32 to vector<2x32xf32>
    %c0_9 = arith.constant 0 : index
    %c0_10 = arith.constant 0 : index
    %c0_11 = arith.constant 0 : index
    %8 = vector.load %arg0[%c0_9, %c0_10, %c0_11] : memref<8x2x128xf32, #tpu.memory_space<vmem>>, vector<1x2x128xf32>
    %9 = vector.shape_cast %8 : vector<1x2x128xf32> to vector<2x128xf32>
    %cst_12 = arith.constant dense<0.000000e+00> : vector<2x128xf32>
    %10 = tpu.matmul %7, %0, %cst_12 {dimension_numbers = #tpu.dot_dimension_numbers<[1], [0], [0], [1], [0, 0, 1, 1], [], []>} : vector<2x32xf32>, vector<32x128xf32>, vector<2x128xf32> -> vector<2x128xf32>
    %11 = arith.addf %9, %10 : vector<2x128xf32>
    %12 = arith.negf %11 : vector<2x128xf32>
    %13 = math.exp %12 : vector<2x128xf32>
    %cst_13 = arith.constant 1.000000e+00 : f32
    %14 = vector.broadcast %cst_13 : f32 to vector<2x128xf32>
    %15 = arith.addf %14, %13 : vector<2x128xf32>
    %16 = arith.divf %14, %15 : vector<2x128xf32>
    %17 = math.tanh %11 : vector<2x128xf32>
    %18 = vector.extract_strided_slice %16 {offsets = [0, 0], sizes = [2, 32], strides = [1, 1]} : vector<2x128xf32> to vector<2x32xf32>
    %19 = vector.extract_strided_slice %16 {offsets = [0, 32], sizes = [2, 32], strides = [1, 1]} : vector<2x128xf32> to vector<2x32xf32>
    %20 = vector.extract_strided_slice %17 {offsets = [0, 64], sizes = [2, 32], strides = [1, 1]} : vector<2x128xf32> to vector<2x32xf32>
    %21 = vector.extract_strided_slice %16 {offsets = [0, 96], sizes = [2, 32], strides = [1, 1]} : vector<2x128xf32> to vector<2x32xf32>
    %22 = arith.mulf %19, %7 : vector<2x32xf32>
    %23 = arith.mulf %18, %20 : vector<2x32xf32>
    %24 = arith.addf %22, %23 : vector<2x32xf32>
    %25 = math.tanh %24 : vector<2x32xf32>
    %26 = arith.mulf %21, %25 : vector<2x32xf32>
    %27 = tpu.concatenate %26, %7 in 1 : vector<2x32xf32>, vector<2x32xf32> -> vector<2x64xf32>
    %cst_14 = arith.constant dense<0.000000e+00> : vector<2x128xf32>
    %28 = tpu.matmul %27, %1, %cst_14 {dimension_numbers = #tpu.dot_dimension_numbers<[1], [0], [0], [1], [0, 0, 1, 1], [], []>} : vector<2x64xf32>, vector<64x128xf32>, vector<2x128xf32> -> vector<2x128xf32>
    %29 = arith.addf %28, %4 : vector<2x128xf32>
    %30 = arith.negf %29 : vector<2x128xf32>
    %31 = math.exp %30 : vector<2x128xf32>
    %cst_15 = arith.constant 1.000000e+00 : f32
    %32 = vector.broadcast %cst_15 : f32 to vector<2x128xf32>
    %33 = arith.addf %32, %31 : vector<2x128xf32>
    %34 = arith.divf %32, %33 : vector<2x128xf32>
    %35 = math.tanh %29 : vector<2x128xf32>
    %36 = vector.extract_strided_slice %34 {offsets = [0, 0], sizes = [2, 32], strides = [1, 1]} : vector<2x128xf32> to vector<2x32xf32>
    %37 = vector.extract_strided_slice %34 {offsets = [0, 32], sizes = [2, 32], strides = [1, 1]} : vector<2x128xf32> to vector<2x32xf32>
    %38 = vector.extract_strided_slice %35 {offsets = [0, 64], sizes = [2, 32], strides = [1, 1]} : vector<2x128xf32> to vector<2x32xf32>
    %39 = vector.extract_strided_slice %34 {offsets = [0, 96], sizes = [2, 32], strides = [1, 1]} : vector<2x128xf32> to vector<2x32xf32>
    %40 = arith.mulf %37, %7 : vector<2x32xf32>
    %41 = arith.mulf %36, %38 : vector<2x32xf32>
    %42 = arith.addf %40, %41 : vector<2x32xf32>
    %43 = math.tanh %42 : vector<2x32xf32>
    %44 = arith.mulf %39, %43 : vector<2x32xf32>
    %c1 = arith.constant 1 : index
    %c0_16 = arith.constant 0 : index
    %c0_17 = arith.constant 0 : index
    %45 = vector.load %arg0[%c1, %c0_16, %c0_17] : memref<8x2x128xf32, #tpu.memory_space<vmem>>, vector<1x2x128xf32>
    %46 = vector.shape_cast %45 : vector<1x2x128xf32> to vector<2x128xf32>
    %cst_18 = arith.constant dense<0.000000e+00> : vector<2x128xf32>
    %47 = tpu.matmul %26, %0, %cst_18 {dimension_numbers = #tpu.dot_dimension_numbers<[1], [0], [0], [1], [0, 0, 1, 1], [], []>} : vector<2x32xf32>, vector<32x128xf32>, vector<2x128xf32> -> vector<2x128xf32>
    %48 = arith.addf %46, %47 : vector<2x128xf32>
    %49 = arith.negf %48 : vector<2x128xf32>
    %50 = math.exp %49 : vector<2x128xf32>
    %cst_19 = arith.constant 1.000000e+00 : f32
    %51 = vector.broadcast %cst_19 : f32 to vector<2x128xf32>
    %52 = arith.addf %51, %50 : vector<2x128xf32>
    %53 = arith.divf %51, %52 : vector<2x128xf32>
    %54 = math.tanh %48 : vector<2x128xf32>
    %55 = vector.extract_strided_slice %53 {offsets = [0, 0], sizes = [2, 32], strides = [1, 1]} : vector<2x128xf32> to vector<2x32xf32>
    %56 = vector.extract_strided_slice %53 {offsets = [0, 32], sizes = [2, 32], strides = [1, 1]} : vector<2x128xf32> to vector<2x32xf32>
    %57 = vector.extract_strided_slice %54 {offsets = [0, 64], sizes = [2, 32], strides = [1, 1]} : vector<2x128xf32> to vector<2x32xf32>
    %58 = vector.extract_strided_slice %53 {offsets = [0, 96], sizes = [2, 32], strides = [1, 1]} : vector<2x128xf32> to vector<2x32xf32>
    %59 = arith.mulf %56, %24 : vector<2x32xf32>
    %60 = arith.mulf %55, %57 : vector<2x32xf32>
    %61 = arith.addf %59, %60 : vector<2x32xf32>
    %62 = math.tanh %61 : vector<2x32xf32>
    %63 = arith.mulf %58, %62 : vector<2x32xf32>
    %64 = tpu.concatenate %63, %44 in 1 : vector<2x32xf32>, vector<2x32xf32> -> vector<2x64xf32>
    %cst_20 = arith.constant dense<0.000000e+00> : vector<2x128xf32>
    %65 = tpu.matmul %64, %1, %cst_20 {dimension_numbers = #tpu.dot_dimension_numbers<[1], [0], [0], [1], [0, 0, 1, 1], [], []>} : vector<2x64xf32>, vector<64x128xf32>, vector<2x128xf32> -> vector<2x128xf32>
    %66 = arith.addf %65, %4 : vector<2x128xf32>
    %67 = arith.negf %66 : vector<2x128xf32>
    %68 = math.exp %67 : vector<2x128xf32>
    %cst_21 = arith.constant 1.000000e+00 : f32
    %69 = vector.broadcast %cst_21 : f32 to vector<2x128xf32>
    %70 = arith.addf %69, %68 : vector<2x128xf32>
    %71 = arith.divf %69, %70 : vector<2x128xf32>
    %72 = math.tanh %66 : vector<2x128xf32>
    %73 = vector.extract_strided_slice %71 {offsets = [0, 0], sizes = [2, 32], strides = [1, 1]} : vector<2x128xf32> to vector<2x32xf32>
    %74 = vector.extract_strided_slice %71 {offsets = [0, 32], sizes = [2, 32], strides = [1, 1]} : vector<2x128xf32> to vector<2x32xf32>
    %75 = vector.extract_strided_slice %72 {offsets = [0, 64], sizes = [2, 32], strides = [1, 1]} : vector<2x128xf32> to vector<2x32xf32>
    %76 = vector.extract_strided_slice %71 {offsets = [0, 96], sizes = [2, 32], strides = [1, 1]} : vector<2x128xf32> to vector<2x32xf32>
    %77 = arith.mulf %74, %42 : vector<2x32xf32>
    %78 = arith.mulf %73, %75 : vector<2x32xf32>
    %79 = arith.addf %77, %78 : vector<2x32xf32>
    %80 = math.tanh %79 : vector<2x32xf32>
    %81 = arith.mulf %76, %80 : vector<2x32xf32>
    %c2 = arith.constant 2 : index
    %c0_22 = arith.constant 0 : index
    %c0_23 = arith.constant 0 : index
    %82 = vector.load %arg0[%c2, %c0_22, %c0_23] : memref<8x2x128xf32, #tpu.memory_space<vmem>>, vector<1x2x128xf32>
    %83 = vector.shape_cast %82 : vector<1x2x128xf32> to vector<2x128xf32>
    %cst_24 = arith.constant dense<0.000000e+00> : vector<2x128xf32>
    %84 = tpu.matmul %63, %0, %cst_24 {dimension_numbers = #tpu.dot_dimension_numbers<[1], [0], [0], [1], [0, 0, 1, 1], [], []>} : vector<2x32xf32>, vector<32x128xf32>, vector<2x128xf32> -> vector<2x128xf32>
    %85 = arith.addf %83, %84 : vector<2x128xf32>
    %86 = arith.negf %85 : vector<2x128xf32>
    %87 = math.exp %86 : vector<2x128xf32>
    %cst_25 = arith.constant 1.000000e+00 : f32
    %88 = vector.broadcast %cst_25 : f32 to vector<2x128xf32>
    %89 = arith.addf %88, %87 : vector<2x128xf32>
    %90 = arith.divf %88, %89 : vector<2x128xf32>
    %91 = math.tanh %85 : vector<2x128xf32>
    %92 = vector.extract_strided_slice %90 {offsets = [0, 0], sizes = [2, 32], strides = [1, 1]} : vector<2x128xf32> to vector<2x32xf32>
    %93 = vector.extract_strided_slice %90 {offsets = [0, 32], sizes = [2, 32], strides = [1, 1]} : vector<2x128xf32> to vector<2x32xf32>
    %94 = vector.extract_strided_slice %91 {offsets = [0, 64], sizes = [2, 32], strides = [1, 1]} : vector<2x128xf32> to vector<2x32xf32>
    %95 = vector.extract_strided_slice %90 {offsets = [0, 96], sizes = [2, 32], strides = [1, 1]} : vector<2x128xf32> to vector<2x32xf32>
    %96 = arith.mulf %93, %61 : vector<2x32xf32>
    %97 = arith.mulf %92, %94 : vector<2x32xf32>
    %98 = arith.addf %96, %97 : vector<2x32xf32>
    %99 = math.tanh %98 : vector<2x32xf32>
    %100 = arith.mulf %95, %99 : vector<2x32xf32>
    %101 = tpu.concatenate %100, %81 in 1 : vector<2x32xf32>, vector<2x32xf32> -> vector<2x64xf32>
    %cst_26 = arith.constant dense<0.000000e+00> : vector<2x128xf32>
    %102 = tpu.matmul %101, %1, %cst_26 {dimension_numbers = #tpu.dot_dimension_numbers<[1], [0], [0], [1], [0, 0, 1, 1], [], []>} : vector<2x64xf32>, vector<64x128xf32>, vector<2x128xf32> -> vector<2x128xf32>
    %103 = arith.addf %102, %4 : vector<2x128xf32>
    %104 = arith.negf %103 : vector<2x128xf32>
    %105 = math.exp %104 : vector<2x128xf32>
    %cst_27 = arith.constant 1.000000e+00 : f32
    %106 = vector.broadcast %cst_27 : f32 to vector<2x128xf32>
    %107 = arith.addf %106, %105 : vector<2x128xf32>
    %108 = arith.divf %106, %107 : vector<2x128xf32>
    %109 = math.tanh %103 : vector<2x128xf32>
    %110 = vector.extract_strided_slice %108 {offsets = [0, 0], sizes = [2, 32], strides = [1, 1]} : vector<2x128xf32> to vector<2x32xf32>
    %111 = vector.extract_strided_slice %108 {offsets = [0, 32], sizes = [2, 32], strides = [1, 1]} : vector<2x128xf32> to vector<2x32xf32>
    %112 = vector.extract_strided_slice %109 {offsets = [0, 64], sizes = [2, 32], strides = [1, 1]} : vector<2x128xf32> to vector<2x32xf32>
    %113 = vector.extract_strided_slice %108 {offsets = [0, 96], sizes = [2, 32], strides = [1, 1]} : vector<2x128xf32> to vector<2x32xf32>
    %114 = arith.mulf %111, %79 : vector<2x32xf32>
    %115 = arith.mulf %110, %112 : vector<2x32xf32>
    %116 = arith.addf %114, %115 : vector<2x32xf32>
    %117 = math.tanh %116 : vector<2x32xf32>
    %118 = arith.mulf %113, %117 : vector<2x32xf32>
    %c3 = arith.constant 3 : index
    %c0_28 = arith.constant 0 : index
    %c0_29 = arith.constant 0 : index
    %119 = vector.load %arg0[%c3, %c0_28, %c0_29] : memref<8x2x128xf32, #tpu.memory_space<vmem>>, vector<1x2x128xf32>
    %120 = vector.shape_cast %119 : vector<1x2x128xf32> to vector<2x128xf32>
    %cst_30 = arith.constant dense<0.000000e+00> : vector<2x128xf32>
    %121 = tpu.matmul %100, %0, %cst_30 {dimension_numbers = #tpu.dot_dimension_numbers<[1], [0], [0], [1], [0, 0, 1, 1], [], []>} : vector<2x32xf32>, vector<32x128xf32>, vector<2x128xf32> -> vector<2x128xf32>
    %122 = arith.addf %120, %121 : vector<2x128xf32>
    %123 = arith.negf %122 : vector<2x128xf32>
    %124 = math.exp %123 : vector<2x128xf32>
    %cst_31 = arith.constant 1.000000e+00 : f32
    %125 = vector.broadcast %cst_31 : f32 to vector<2x128xf32>
    %126 = arith.addf %125, %124 : vector<2x128xf32>
    %127 = arith.divf %125, %126 : vector<2x128xf32>
    %128 = math.tanh %122 : vector<2x128xf32>
    %129 = vector.extract_strided_slice %127 {offsets = [0, 0], sizes = [2, 32], strides = [1, 1]} : vector<2x128xf32> to vector<2x32xf32>
    %130 = vector.extract_strided_slice %127 {offsets = [0, 32], sizes = [2, 32], strides = [1, 1]} : vector<2x128xf32> to vector<2x32xf32>
    %131 = vector.extract_strided_slice %128 {offsets = [0, 64], sizes = [2, 32], strides = [1, 1]} : vector<2x128xf32> to vector<2x32xf32>
    %132 = vector.extract_strided_slice %127 {offsets = [0, 96], sizes = [2, 32], strides = [1, 1]} : vector<2x128xf32> to vector<2x32xf32>
    %133 = arith.mulf %130, %98 : vector<2x32xf32>
    %134 = arith.mulf %129, %131 : vector<2x32xf32>
    %135 = arith.addf %133, %134 : vector<2x32xf32>
    %136 = math.tanh %135 : vector<2x32xf32>
    %137 = arith.mulf %132, %136 : vector<2x32xf32>
    %138 = tpu.concatenate %137, %118 in 1 : vector<2x32xf32>, vector<2x32xf32> -> vector<2x64xf32>
    %cst_32 = arith.constant dense<0.000000e+00> : vector<2x128xf32>
    %139 = tpu.matmul %138, %1, %cst_32 {dimension_numbers = #tpu.dot_dimension_numbers<[1], [0], [0], [1], [0, 0, 1, 1], [], []>} : vector<2x64xf32>, vector<64x128xf32>, vector<2x128xf32> -> vector<2x128xf32>
    %140 = arith.addf %139, %4 : vector<2x128xf32>
    %141 = arith.negf %140 : vector<2x128xf32>
    %142 = math.exp %141 : vector<2x128xf32>
    %cst_33 = arith.constant 1.000000e+00 : f32
    %143 = vector.broadcast %cst_33 : f32 to vector<2x128xf32>
    %144 = arith.addf %143, %142 : vector<2x128xf32>
    %145 = arith.divf %143, %144 : vector<2x128xf32>
    %146 = math.tanh %140 : vector<2x128xf32>
    %147 = vector.extract_strided_slice %145 {offsets = [0, 0], sizes = [2, 32], strides = [1, 1]} : vector<2x128xf32> to vector<2x32xf32>
    %148 = vector.extract_strided_slice %145 {offsets = [0, 32], sizes = [2, 32], strides = [1, 1]} : vector<2x128xf32> to vector<2x32xf32>
    %149 = vector.extract_strided_slice %146 {offsets = [0, 64], sizes = [2, 32], strides = [1, 1]} : vector<2x128xf32> to vector<2x32xf32>
    %150 = vector.extract_strided_slice %145 {offsets = [0, 96], sizes = [2, 32], strides = [1, 1]} : vector<2x128xf32> to vector<2x32xf32>
    %151 = arith.mulf %148, %116 : vector<2x32xf32>
    %152 = arith.mulf %147, %149 : vector<2x32xf32>
    %153 = arith.addf %151, %152 : vector<2x32xf32>
    %154 = math.tanh %153 : vector<2x32xf32>
    %155 = arith.mulf %150, %154 : vector<2x32xf32>
    %c4 = arith.constant 4 : index
    %c0_34 = arith.constant 0 : index
    %c0_35 = arith.constant 0 : index
    %156 = vector.load %arg0[%c4, %c0_34, %c0_35] : memref<8x2x128xf32, #tpu.memory_space<vmem>>, vector<1x2x128xf32>
    %157 = vector.shape_cast %156 : vector<1x2x128xf32> to vector<2x128xf32>
    %cst_36 = arith.constant dense<0.000000e+00> : vector<2x128xf32>
    %158 = tpu.matmul %137, %0, %cst_36 {dimension_numbers = #tpu.dot_dimension_numbers<[1], [0], [0], [1], [0, 0, 1, 1], [], []>} : vector<2x32xf32>, vector<32x128xf32>, vector<2x128xf32> -> vector<2x128xf32>
    %159 = arith.addf %157, %158 : vector<2x128xf32>
    %160 = arith.negf %159 : vector<2x128xf32>
    %161 = math.exp %160 : vector<2x128xf32>
    %cst_37 = arith.constant 1.000000e+00 : f32
    %162 = vector.broadcast %cst_37 : f32 to vector<2x128xf32>
    %163 = arith.addf %162, %161 : vector<2x128xf32>
    %164 = arith.divf %162, %163 : vector<2x128xf32>
    %165 = math.tanh %159 : vector<2x128xf32>
    %166 = vector.extract_strided_slice %164 {offsets = [0, 0], sizes = [2, 32], strides = [1, 1]} : vector<2x128xf32> to vector<2x32xf32>
    %167 = vector.extract_strided_slice %164 {offsets = [0, 32], sizes = [2, 32], strides = [1, 1]} : vector<2x128xf32> to vector<2x32xf32>
    %168 = vector.extract_strided_slice %165 {offsets = [0, 64], sizes = [2, 32], strides = [1, 1]} : vector<2x128xf32> to vector<2x32xf32>
    %169 = vector.extract_strided_slice %164 {offsets = [0, 96], sizes = [2, 32], strides = [1, 1]} : vector<2x128xf32> to vector<2x32xf32>
    %170 = arith.mulf %167, %135 : vector<2x32xf32>
    %171 = arith.mulf %166, %168 : vector<2x32xf32>
    %172 = arith.addf %170, %171 : vector<2x32xf32>
    %173 = math.tanh %172 : vector<2x32xf32>
    %174 = arith.mulf %169, %173 : vector<2x32xf32>
    %175 = tpu.concatenate %174, %155 in 1 : vector<2x32xf32>, vector<2x32xf32> -> vector<2x64xf32>
    %cst_38 = arith.constant dense<0.000000e+00> : vector<2x128xf32>
    %176 = tpu.matmul %175, %1, %cst_38 {dimension_numbers = #tpu.dot_dimension_numbers<[1], [0], [0], [1], [0, 0, 1, 1], [], []>} : vector<2x64xf32>, vector<64x128xf32>, vector<2x128xf32> -> vector<2x128xf32>
    %177 = arith.addf %176, %4 : vector<2x128xf32>
    %178 = arith.negf %177 : vector<2x128xf32>
    %179 = math.exp %178 : vector<2x128xf32>
    %cst_39 = arith.constant 1.000000e+00 : f32
    %180 = vector.broadcast %cst_39 : f32 to vector<2x128xf32>
    %181 = arith.addf %180, %179 : vector<2x128xf32>
    %182 = arith.divf %180, %181 : vector<2x128xf32>
    %183 = math.tanh %177 : vector<2x128xf32>
    %184 = vector.extract_strided_slice %182 {offsets = [0, 0], sizes = [2, 32], strides = [1, 1]} : vector<2x128xf32> to vector<2x32xf32>
    %185 = vector.extract_strided_slice %182 {offsets = [0, 32], sizes = [2, 32], strides = [1, 1]} : vector<2x128xf32> to vector<2x32xf32>
    %186 = vector.extract_strided_slice %183 {offsets = [0, 64], sizes = [2, 32], strides = [1, 1]} : vector<2x128xf32> to vector<2x32xf32>
    %187 = vector.extract_strided_slice %182 {offsets = [0, 96], sizes = [2, 32], strides = [1, 1]} : vector<2x128xf32> to vector<2x32xf32>
    %188 = arith.mulf %185, %153 : vector<2x32xf32>
    %189 = arith.mulf %184, %186 : vector<2x32xf32>
    %190 = arith.addf %188, %189 : vector<2x32xf32>
    %191 = math.tanh %190 : vector<2x32xf32>
    %192 = arith.mulf %187, %191 : vector<2x32xf32>
    %c5 = arith.constant 5 : index
    %c0_40 = arith.constant 0 : index
    %c0_41 = arith.constant 0 : index
    %193 = vector.load %arg0[%c5, %c0_40, %c0_41] : memref<8x2x128xf32, #tpu.memory_space<vmem>>, vector<1x2x128xf32>
    %194 = vector.shape_cast %193 : vector<1x2x128xf32> to vector<2x128xf32>
    %cst_42 = arith.constant dense<0.000000e+00> : vector<2x128xf32>
    %195 = tpu.matmul %174, %0, %cst_42 {dimension_numbers = #tpu.dot_dimension_numbers<[1], [0], [0], [1], [0, 0, 1, 1], [], []>} : vector<2x32xf32>, vector<32x128xf32>, vector<2x128xf32> -> vector<2x128xf32>
    %196 = arith.addf %194, %195 : vector<2x128xf32>
    %197 = arith.negf %196 : vector<2x128xf32>
    %198 = math.exp %197 : vector<2x128xf32>
    %cst_43 = arith.constant 1.000000e+00 : f32
    %199 = vector.broadcast %cst_43 : f32 to vector<2x128xf32>
    %200 = arith.addf %199, %198 : vector<2x128xf32>
    %201 = arith.divf %199, %200 : vector<2x128xf32>
    %202 = math.tanh %196 : vector<2x128xf32>
    %203 = vector.extract_strided_slice %201 {offsets = [0, 0], sizes = [2, 32], strides = [1, 1]} : vector<2x128xf32> to vector<2x32xf32>
    %204 = vector.extract_strided_slice %201 {offsets = [0, 32], sizes = [2, 32], strides = [1, 1]} : vector<2x128xf32> to vector<2x32xf32>
    %205 = vector.extract_strided_slice %202 {offsets = [0, 64], sizes = [2, 32], strides = [1, 1]} : vector<2x128xf32> to vector<2x32xf32>
    %206 = vector.extract_strided_slice %201 {offsets = [0, 96], sizes = [2, 32], strides = [1, 1]} : vector<2x128xf32> to vector<2x32xf32>
    %207 = arith.mulf %204, %172 : vector<2x32xf32>
    %208 = arith.mulf %203, %205 : vector<2x32xf32>
    %209 = arith.addf %207, %208 : vector<2x32xf32>
    %210 = math.tanh %209 : vector<2x32xf32>
    %211 = arith.mulf %206, %210 : vector<2x32xf32>
    %212 = tpu.concatenate %211, %192 in 1 : vector<2x32xf32>, vector<2x32xf32> -> vector<2x64xf32>
    %cst_44 = arith.constant dense<0.000000e+00> : vector<2x128xf32>
    %213 = tpu.matmul %212, %1, %cst_44 {dimension_numbers = #tpu.dot_dimension_numbers<[1], [0], [0], [1], [0, 0, 1, 1], [], []>} : vector<2x64xf32>, vector<64x128xf32>, vector<2x128xf32> -> vector<2x128xf32>
    %214 = arith.addf %213, %4 : vector<2x128xf32>
    %215 = arith.negf %214 : vector<2x128xf32>
    %216 = math.exp %215 : vector<2x128xf32>
    %cst_45 = arith.constant 1.000000e+00 : f32
    %217 = vector.broadcast %cst_45 : f32 to vector<2x128xf32>
    %218 = arith.addf %217, %216 : vector<2x128xf32>
    %219 = arith.divf %217, %218 : vector<2x128xf32>
    %220 = math.tanh %214 : vector<2x128xf32>
    %221 = vector.extract_strided_slice %219 {offsets = [0, 0], sizes = [2, 32], strides = [1, 1]} : vector<2x128xf32> to vector<2x32xf32>
    %222 = vector.extract_strided_slice %219 {offsets = [0, 32], sizes = [2, 32], strides = [1, 1]} : vector<2x128xf32> to vector<2x32xf32>
    %223 = vector.extract_strided_slice %220 {offsets = [0, 64], sizes = [2, 32], strides = [1, 1]} : vector<2x128xf32> to vector<2x32xf32>
    %224 = vector.extract_strided_slice %219 {offsets = [0, 96], sizes = [2, 32], strides = [1, 1]} : vector<2x128xf32> to vector<2x32xf32>
    %225 = arith.mulf %222, %190 : vector<2x32xf32>
    %226 = arith.mulf %221, %223 : vector<2x32xf32>
    %227 = arith.addf %225, %226 : vector<2x32xf32>
    %228 = math.tanh %227 : vector<2x32xf32>
    %229 = arith.mulf %224, %228 : vector<2x32xf32>
    %c6 = arith.constant 6 : index
    %c0_46 = arith.constant 0 : index
    %c0_47 = arith.constant 0 : index
    %230 = vector.load %arg0[%c6, %c0_46, %c0_47] : memref<8x2x128xf32, #tpu.memory_space<vmem>>, vector<1x2x128xf32>
    %231 = vector.shape_cast %230 : vector<1x2x128xf32> to vector<2x128xf32>
    %cst_48 = arith.constant dense<0.000000e+00> : vector<2x128xf32>
    %232 = tpu.matmul %211, %0, %cst_48 {dimension_numbers = #tpu.dot_dimension_numbers<[1], [0], [0], [1], [0, 0, 1, 1], [], []>} : vector<2x32xf32>, vector<32x128xf32>, vector<2x128xf32> -> vector<2x128xf32>
    %233 = arith.addf %231, %232 : vector<2x128xf32>
    %234 = arith.negf %233 : vector<2x128xf32>
    %235 = math.exp %234 : vector<2x128xf32>
    %cst_49 = arith.constant 1.000000e+00 : f32
    %236 = vector.broadcast %cst_49 : f32 to vector<2x128xf32>
    %237 = arith.addf %236, %235 : vector<2x128xf32>
    %238 = arith.divf %236, %237 : vector<2x128xf32>
    %239 = math.tanh %233 : vector<2x128xf32>
    %240 = vector.extract_strided_slice %238 {offsets = [0, 0], sizes = [2, 32], strides = [1, 1]} : vector<2x128xf32> to vector<2x32xf32>
    %241 = vector.extract_strided_slice %238 {offsets = [0, 32], sizes = [2, 32], strides = [1, 1]} : vector<2x128xf32> to vector<2x32xf32>
    %242 = vector.extract_strided_slice %239 {offsets = [0, 64], sizes = [2, 32], strides = [1, 1]} : vector<2x128xf32> to vector<2x32xf32>
    %243 = vector.extract_strided_slice %238 {offsets = [0, 96], sizes = [2, 32], strides = [1, 1]} : vector<2x128xf32> to vector<2x32xf32>
    %244 = arith.mulf %241, %209 : vector<2x32xf32>
    %245 = arith.mulf %240, %242 : vector<2x32xf32>
    %246 = arith.addf %244, %245 : vector<2x32xf32>
    %247 = math.tanh %246 : vector<2x32xf32>
    %248 = arith.mulf %243, %247 : vector<2x32xf32>
    %249 = tpu.concatenate %248, %229 in 1 : vector<2x32xf32>, vector<2x32xf32> -> vector<2x64xf32>
    %cst_50 = arith.constant dense<0.000000e+00> : vector<2x128xf32>
    %250 = tpu.matmul %249, %1, %cst_50 {dimension_numbers = #tpu.dot_dimension_numbers<[1], [0], [0], [1], [0, 0, 1, 1], [], []>} : vector<2x64xf32>, vector<64x128xf32>, vector<2x128xf32> -> vector<2x128xf32>
    %251 = arith.addf %250, %4 : vector<2x128xf32>
    %252 = arith.negf %251 : vector<2x128xf32>
    %253 = math.exp %252 : vector<2x128xf32>
    %cst_51 = arith.constant 1.000000e+00 : f32
    %254 = vector.broadcast %cst_51 : f32 to vector<2x128xf32>
    %255 = arith.addf %254, %253 : vector<2x128xf32>
    %256 = arith.divf %254, %255 : vector<2x128xf32>
    %257 = math.tanh %251 : vector<2x128xf32>
    %258 = vector.extract_strided_slice %256 {offsets = [0, 0], sizes = [2, 32], strides = [1, 1]} : vector<2x128xf32> to vector<2x32xf32>
    %259 = vector.extract_strided_slice %256 {offsets = [0, 32], sizes = [2, 32], strides = [1, 1]} : vector<2x128xf32> to vector<2x32xf32>
    %260 = vector.extract_strided_slice %257 {offsets = [0, 64], sizes = [2, 32], strides = [1, 1]} : vector<2x128xf32> to vector<2x32xf32>
    %261 = vector.extract_strided_slice %256 {offsets = [0, 96], sizes = [2, 32], strides = [1, 1]} : vector<2x128xf32> to vector<2x32xf32>
    %262 = arith.mulf %259, %227 : vector<2x32xf32>
    %263 = arith.mulf %258, %260 : vector<2x32xf32>
    %264 = arith.addf %262, %263 : vector<2x32xf32>
    %265 = math.tanh %264 : vector<2x32xf32>
    %266 = arith.mulf %261, %265 : vector<2x32xf32>
    %c7 = arith.constant 7 : index
    %c0_52 = arith.constant 0 : index
    %c0_53 = arith.constant 0 : index
    %267 = vector.load %arg0[%c7, %c0_52, %c0_53] : memref<8x2x128xf32, #tpu.memory_space<vmem>>, vector<1x2x128xf32>
    %268 = vector.shape_cast %267 : vector<1x2x128xf32> to vector<2x128xf32>
    %cst_54 = arith.constant dense<0.000000e+00> : vector<2x128xf32>
    %269 = tpu.matmul %248, %0, %cst_54 {dimension_numbers = #tpu.dot_dimension_numbers<[1], [0], [0], [1], [0, 0, 1, 1], [], []>} : vector<2x32xf32>, vector<32x128xf32>, vector<2x128xf32> -> vector<2x128xf32>
    %270 = arith.addf %268, %269 : vector<2x128xf32>
    %271 = arith.negf %270 : vector<2x128xf32>
    %272 = math.exp %271 : vector<2x128xf32>
    %cst_55 = arith.constant 1.000000e+00 : f32
    %273 = vector.broadcast %cst_55 : f32 to vector<2x128xf32>
    %274 = arith.addf %273, %272 : vector<2x128xf32>
    %275 = arith.divf %273, %274 : vector<2x128xf32>
    %276 = math.tanh %270 : vector<2x128xf32>
    %277 = vector.extract_strided_slice %275 {offsets = [0, 0], sizes = [2, 32], strides = [1, 1]} : vector<2x128xf32> to vector<2x32xf32>
    %278 = vector.extract_strided_slice %275 {offsets = [0, 32], sizes = [2, 32], strides = [1, 1]} : vector<2x128xf32> to vector<2x32xf32>
    %279 = vector.extract_strided_slice %276 {offsets = [0, 64], sizes = [2, 32], strides = [1, 1]} : vector<2x128xf32> to vector<2x32xf32>
    %280 = vector.extract_strided_slice %275 {offsets = [0, 96], sizes = [2, 32], strides = [1, 1]} : vector<2x128xf32> to vector<2x32xf32>
    %281 = arith.mulf %278, %246 : vector<2x32xf32>
    %282 = arith.mulf %277, %279 : vector<2x32xf32>
    %283 = arith.addf %281, %282 : vector<2x32xf32>
    %284 = math.tanh %283 : vector<2x32xf32>
    %285 = arith.mulf %280, %284 : vector<2x32xf32>
    %286 = tpu.concatenate %285, %266 in 1 : vector<2x32xf32>, vector<2x32xf32> -> vector<2x64xf32>
    %cst_56 = arith.constant dense<0.000000e+00> : vector<2x128xf32>
    %287 = tpu.matmul %286, %1, %cst_56 {dimension_numbers = #tpu.dot_dimension_numbers<[1], [0], [0], [1], [0, 0, 1, 1], [], []>} : vector<2x64xf32>, vector<64x128xf32>, vector<2x128xf32> -> vector<2x128xf32>
    %288 = arith.addf %287, %4 : vector<2x128xf32>
    %289 = arith.negf %288 : vector<2x128xf32>
    %290 = math.exp %289 : vector<2x128xf32>
    %cst_57 = arith.constant 1.000000e+00 : f32
    %291 = vector.broadcast %cst_57 : f32 to vector<2x128xf32>
    %292 = arith.addf %291, %290 : vector<2x128xf32>
    %293 = arith.divf %291, %292 : vector<2x128xf32>
    %294 = math.tanh %288 : vector<2x128xf32>
    %295 = vector.extract_strided_slice %293 {offsets = [0, 0], sizes = [2, 32], strides = [1, 1]} : vector<2x128xf32> to vector<2x32xf32>
    %296 = vector.extract_strided_slice %293 {offsets = [0, 32], sizes = [2, 32], strides = [1, 1]} : vector<2x128xf32> to vector<2x32xf32>
    %297 = vector.extract_strided_slice %294 {offsets = [0, 64], sizes = [2, 32], strides = [1, 1]} : vector<2x128xf32> to vector<2x32xf32>
    %298 = vector.extract_strided_slice %293 {offsets = [0, 96], sizes = [2, 32], strides = [1, 1]} : vector<2x128xf32> to vector<2x32xf32>
    %299 = arith.mulf %296, %264 : vector<2x32xf32>
    %300 = arith.mulf %295, %297 : vector<2x32xf32>
    %301 = arith.addf %299, %300 : vector<2x32xf32>
    %302 = math.tanh %301 : vector<2x32xf32>
    %303 = arith.mulf %298, %302 : vector<2x32xf32>
    %304 = vector.broadcast %5 : vector<1x32xf32> to vector<2x32xf32>
    %305 = arith.mulf %303, %304 : vector<2x32xf32>
    %cst_58 = arith.constant dense<0.000000e+00> : vector<2xf32>
    %306 = vector.multi_reduction <add>, %305, %cst_58 [1] : vector<2x32xf32> to vector<2xf32>
    %307 = vector.shape_cast %306 : vector<2xf32> to vector<2x1xf32>
    %308 = vector.broadcast %6 : vector<1x1xf32> to vector<2x1xf32>
    %309 = arith.addf %307, %308 : vector<2x1xf32>
    %310 = arith.negf %309 : vector<2x1xf32>
    %311 = math.exp %310 : vector<2x1xf32>
    %cst_59 = arith.constant 1.000000e+00 : f32
    %312 = vector.broadcast %cst_59 : f32 to vector<2x1xf32>
    %313 = arith.addf %312, %311 : vector<2x1xf32>
    %314 = arith.divf %312, %313 : vector<2x1xf32>
    %c0_60 = arith.constant 0 : index
    %c0_61 = arith.constant 0 : index
    %315 = vector.load %arg6[%c0_60, %c0_61] : memref<2x1xf32, #tpu.memory_space<vmem>>, vector<2x1xf32>
    tpu.vector_store %arg6[%c0_60, %c0_61], %314 {strides = array<i32>} : memref<2x1xf32, #tpu.memory_space<vmem>>, vector<2x1xf32>,
    return
  }
}

</mosaic_0001>

<bundles_post_ra>
// kernel: lstm_forward.1
= control target key start
LH: loop header
LB: loop body
LE: loop exit
PB: predicated region body
PF: predicated region fallthrough
CT: control target
= control target key end

     0   :  { %v2258_v0 = vmov 0.0   ;;  %vm2259_vm0 = vmmov 0   ;;  %s2260_s30 = smov 64   ;;  %s2261_s7 = smov 32   ;;  %vm47_vm1 = vcmask 261120   ;;  %vm151_vm2 = vcmask 523264   ;;  %s2782_s1 = inlined_call_operand.vmem [shape: f32[32,128], index: 1, kind: input, shape index: {}]   ;;  %s2783_s0 = inlined_call_operand.vmem [shape: f32[8,2,128], index: 0, kind: input, shape index: {}]   ;;  %s2784_s2 = inlined_call_operand.vmem [shape: f32[64,128], index: 2, kind: input, shape index: {}]   ;;  %s2785_s3 = inlined_call_operand.vmem [shape: f32[1,128], index: 3, kind: input, shape index: {}]   ;;  %s2786_s4 = inlined_call_operand.vmem [shape: f32[1,32], index: 4, kind: input, shape index: {}]   ;;  %s2787_s5 = inlined_call_operand.<no memory space> [shape: f32[1,1], index: 5, kind: input, shape index: {}]   ;;  %s2788_s6 = inlined_call_operand.vmem [shape: f32[2,1], index: 6, kind: output, shape index: {}]  }
   0x1   :  { %1874 = vmatprep.subr.mxu1 %v2258_v0  ;;  %v2302_v1 = vld [vmem:[%s2782_s1 + $0x18] sm:$0xff]  ;;  %v2307_v2 = vld [vmem:[%s2782_s1 + $0x10] sm:$0xff]  ;;  %1882 = vmatprep.mubr.msk.f32.mxu1 %vm2259_vm0, %v2258_v0  ;;  %v2317_v3 = vld [vmem:[%s2782_s1 + $0x8] sm:$0xff]  ;;  %vm1697_vm3 = vcmask 254976   ;;  %vm1714_vm4 = vcmask 1024  }
   0x2   :  { %1875 = vmatpush3.msra.mxu1 %v2302_v1  ;;  %1904 = vmatprep.subr.mxu0 %v2258_v0  ;;  %v2326_v4 = vld [vmem:[%s2782_s1] sm:$0xff]  ;;  %v2354_v19 = vld [vmem:[%s2784_s2 + $0x38] sm:$0xff]  ;;  %v2359_v20 = vld [vmem:[%s2784_s2 + $0x30] sm:$0xff] }
   0x3   :  { %1876 = vmatprep.subr.mxu1 %v2258_v0  ;;  %1905 = vmatpush3.msra.mxu0 %v2302_v1  ;;  %v46_v5 = vld [vmem:[%s2783_s0] sm:$0x3]  ;;  %v2366_v21 = vld [vmem:[%s2784_s2 + $0x28] sm:$0xff]  ;;  %v2380_v23 = vld [vmem:[%s2784_s2 + $0x18] sm:$0xff] }
   0x4   :  { %1877 = vmatpush3.msra.mxu1 %v2307_v2  ;;  %1906 = vmatprep.subr.mxu0 %v2258_v0  ;;  %v2373_v22 = vld [vmem:[%s2784_s2 + $0x20] sm:$0xff]  ;;  %v2387_v24 = vld [vmem:[%s2784_s2 + $0x10] sm:$0xff]  ;;  %v2395_v26 = vld [vmem:[%s2784_s2 + $0x8] sm:$0xff] }
   0x5   :  { %1878 = vmatprep.subr.mxu1 %v2258_v0  ;;  %1907 = vmatpush3.msra.mxu0 %v2307_v2  ;;  %v2404_v27 = vld [vmem:[%s2784_s2] sm:$0xff] }
   0x6   :  { %1879 = vmatpush3.msra.mxu1 %v2317_v3  ;;  %1908 = vmatprep.subr.mxu0 %v2258_v0  ;;  %v1724_v32 = vld [vmem:[%s2783_s0 + $0x2] sm:$0x3]  ;;  %v2446_v33 = vld [vmem:[%s2785_s3] ss:$0 sm:$0xff] }
   0x7   :  { %1880 = vmatprep.subr.mxu1 %v2258_v0  ;;  %1909 = vmatpush3.msra.mxu0 %v2317_v3 }
   0x8   :  { %1881 = vmatpush3.msra.mxu1 %v2326_v4  ;;  %1910 = vmatprep.subr.mxu0 %v2258_v0 }
   0x9   :  { %1883 = vmatmul.mubr.f32.vlgmr.msra.gmra.mxu1 %v2258_v0  ;;  %1885 = vmatprep.subr.mxu1 %v2258_v0 }
   0xa   :  { %1911 = vmatpush3.msra.mxu0 %v2326_v4  ;;  %1912 = vmatprep.mubr.msk.f32.mxu0 %vm2259_vm0, %v2258_v0 }
   0xb   :  { %1901 = vmatprep.mubr.msk.f32.mxu1 %vm2259_vm0, %v2258_v0  ;;  %1915 = vmatprep.subr.mxu0 %v2258_v0 }
   0xc   :  { %1886 = vmatpush3.msra.mxu1 %v2354_v19 }
   0xd   :  { %1887 = vmatprep.subr.mxu1 %v2258_v0 }
   0xe   :  { %1888 = vmatpush3.msra.mxu1 %v2359_v20 }
   0xf   :  { %1889 = vmatprep.subr.mxu1 %v2258_v0 }
  0x10   :  { %1890 = vmatpush3.msra.mxu1 %v2366_v21 }
  0x11   :  { %1891 = vmatprep.subr.mxu1 %v2258_v0 }
  0x12   :  { %1892 = vmatpush3.msra.mxu1 %v2373_v22 }
  0x13   :  { %1893 = vmatprep.subr.mxu1 %v2258_v0 }
  0x14   :  { %1894 = vmatpush3.msra.mxu1 %v2380_v23 }
  0x15   :  { %1895 = vmatprep.subr.mxu1 %v2258_v0 }
  0x16   :  { %1896 = vmatpush3.msra.mxu1 %v2387_v24 }
  0x17   :  { %1897 = vmatprep.subr.mxu1 %v2258_v0 }
  0x18   :  { %1898 = vmatpush3.msra.mxu1 %v2395_v26 }
  0x19   :  { %1899 = vmatprep.subr.mxu1 %v2258_v0 }
  0x1a   :  { %1900 = vmatpush3.msra.mxu1 %v2404_v27 }
  0x1b   :  { %1934 = vmatprep.subr.mxu1 %v2258_v0 }
  0xc9   :  { %v117_v6 = vpop.f32.mrf.mxu1 }
  0xca   :  { %v121_v7 = vadd.f32 %v117_v6, %v46_v5 }
  0xcb   :  { %v1884_v8 = vpop.f32.mrf.mxu1 }
  0xcc   :  { %2119 = vtanh.f32 %v121_v7  ;;  %v1721_v10 = vmul.f32 -1.442695, %v121_v7 }
  0xce   :  { %2121 = vpow2.f32 %v1721_v10  ;;  %v1729_v10 = vld [vmem:[%s2783_s0 + $0x4] sm:$0x3] }
  0xd9   :  { %v2120_v9 = vpop.eup %2119 }
  0xda   :  { %131 = vrot.lane.b32.xlu0 %v2120_v9, %s2260_s30 }
  0xdb   :  { %v2122_v11 = vpop.eup %2121 }
  0xdc   :  { %v125_v12 = vadd.f32 1.0, %v2122_v11 }
  0xde   :  { %2123 = vrcp.f32 %v125_v12 }
  0xeb   :  { %v2124_v13 = vpop.eup %2123 }
  0xec   :  { %v129_v16 = vmul.f32 0.0, %v2124_v13 }
 0x14c   :  { %v132_v14 = vpop.permute.xlu0 %131 }
 0x14d   :  { %v134_v15 = vmul.f32 %v2124_v13, %v132_v14 }
 0x14f   :  { %136 = vrot.lane.b32.xlu0 %v134_v15, %s2261_s7 }
 0x1c1   :  { %v137_v17 = vpop.permute.xlu0 %136 }
 0x1c2   :  { %v2348_v18 = vadd.f32 %v137_v17, %v129_v16 }
 0x1c4   :  { %2125 = vtanh.f32 %v2348_v18 }
 0x1d1   :  { %v2126_v25 = vpop.eup %2125 }
 0x1d2   :  { %142 = vrot.lane.b32.xlu1 %v2126_v25, %s2260_s30 }
 0x244   :  { %v143_v28 = vpop.permute.xlu1 %142 }
 0x245   :  { %v145_v29 = vmul.f32 %v2124_v13, %v143_v28 }
 0x247   :  { %147 = vrot.lane.b32.xlu1 %v145_v29, %s2261_s7 }
 0x2b9   :  { %v148_v30 = vpop.permute.xlu1 %147 }
 0x2ba   :  { %v150_v31 = vsel %vm47_vm1, %v148_v30, 0.0  ;;  %1913 = vmatmul.mubr.msk.f32.vlgmr.msra.gmra.mxu0 %vm47_vm1, %v148_v30 }
 0x2bb   :  { %1902 = vmatmul.mubr.msk.f32.vlgmr.msra.gmra.mxu1 %vm151_vm2, %v150_v31  ;;  %1916 = vmatpush3.msra.mxu0 %v2354_v19 }
 0x2bc   :  { %1917 = vmatprep.subr.mxu0 %v2258_v0  ;;  %1935 = vmatpush3.msra.mxu1 %v2302_v1 }
 0x2bd   :  { %1918 = vmatpush3.msra.mxu0 %v2359_v20  ;;  %1936 = vmatprep.subr.mxu1 %v2258_v0 }
 0x2be   :  { %1919 = vmatprep.subr.mxu0 %v2258_v0  ;;  %1937 = vmatpush3.msra.mxu1 %v2307_v2 }
 0x2bf   :  { %1920 = vmatpush3.msra.mxu0 %v2366_v21  ;;  %1938 = vmatprep.subr.mxu1 %v2258_v0 }
 0x2c0   :  { %1921 = vmatprep.subr.mxu0 %v2258_v0  ;;  %1939 = vmatpush3.msra.mxu1 %v2317_v3 }
 0x2c1   :  { %1922 = vmatpush3.msra.mxu0 %v2373_v22  ;;  %1940 = vmatprep.subr.mxu1 %v2258_v0 }
 0x2c2   :  { %1923 = vmatprep.subr.mxu0 %v2258_v0  ;;  %1941 = vmatpush3.msra.mxu1 %v2326_v4 }
 0x2c3   :  { %1924 = vmatpush3.msra.mxu0 %v2380_v23  ;;  %1942 = vmatprep.mubr.msk.f32.mxu1 %vm2259_vm0, %v2258_v0 }
 0x2c4   :  { %1925 = vmatprep.subr.mxu0 %v2258_v0  ;;  %1931 = vmatprep.mubr.msk.f32.mxu0 %vm2259_vm0, %v2258_v0 }
 0x2c5   :  { %1926 = vmatpush3.msra.mxu0 %v2387_v24  ;;  %1945 = vmatprep.subr.mxu1 %v2258_v0 }
 0x2c6   :  { %1927 = vmatprep.subr.mxu0 %v2258_v0 }
 0x2c7   :  { %1928 = vmatpush3.msra.mxu0 %v2395_v26 }
 0x2c8   :  { %1929 = vmatprep.subr.mxu0 %v2258_v0 }
 0x2c9   :  { %1930 = vmatpush3.msra.mxu0 %v2404_v27 }
 0x2ca   :  { %1964 = vmatprep.subr.mxu0 %v2258_v0 }
 0x37a   :  { %v319_v34 = vpop.f32.mrf.mxu0 }
 0x37b   :  { %v323_v35 = vadd.f32 %v1724_v32, %v319_v34  ;;  %v221_v36 = vpop.f32.mrf.mxu1 }
 0x37c   :  { %v222_v37 = vadd.f32 %v2446_v33, %v221_v36  ;;  %v1914_v38 = vpop.f32.mrf.mxu0 }
 0x37d   :  { %2127 = vtanh.f32 %v323_v35  ;;  %v1903_v39 = vpop.f32.mrf.mxu1  ;;  %v1726_v42 = vmul.f32 -1.442695, %v323_v35 }
 0x37e   :  { %2129 = vtanh.f32 %v222_v37  ;;  %v1723_v43 = vmul.f32 -1.442695, %v222_v37 }
 0x37f   :  { %2131 = vpow2.f32 %v1726_v42 }
 0x380   :  { %2133 = vpow2.f32 %v1723_v43 }
 0x38a   :  { %v2128_v40 = vpop.eup %2127 }
 0x38b   :  { %v2130_v41 = vpop.eup %2129  ;;  %333 = vrot.lane.b32.xlu1 %v2128_v40, %s2260_s30 }
 0x38c   :  { %234 = vrot.lane.b32.xlu0 %v2130_v41, %s2260_s30  ;;  %v2132_v44 = vpop.eup %2131 }
 0x38d   :  { %v2134_v45 = vpop.eup %2133  ;;  %v327_v46 = vadd.f32 1.0, %v2132_v44 }
 0x38e   :  { %v228_v47 = vadd.f32 1.0, %v2134_v45 }
 0x38f   :  { %2135 = vrcp.f32 %v327_v46 }
 0x390   :  { %2137 = vrcp.f32 %v228_v47 }
 0x39c   :  { %v2136_v48 = vpop.eup %2135 }
 0x39d   :  { %v2138_v50 = vpop.eup %2137  ;;  %v331_v54 = vmul.f32 %v2136_v48, %v2348_v18 }
 0x39e   :  { %v232_v56 = vmul.f32 0.0, %v2138_v50 }
 0x3fd   :  { %v334_v49 = vpop.permute.xlu1 %333 }
 0x3fe   :  { %v336_v51 = vmul.f32 %v2136_v48, %v334_v49  ;;  %v235_v52 = vpop.permute.xlu0 %234 }
 0x3ff   :  { %v237_v53 = vmul.f32 %v2138_v50, %v235_v52 }
 0x400   :  { %338 = vrot.lane.b32.xlu1 %v336_v51, %s2261_s7 }
 0x401   :  { %239 = vrot.lane.b32.xlu0 %v237_v53, %s2261_s7 }
 0x472   :  { %v339_v55 = vpop.permute.xlu1 %338 }
 0x473   :  { %v2454_v57 = vadd.f32 %v339_v55, %v331_v54  ;;  %v240_v58 = vpop.permute.xlu0 %239  ;;  %v1734_v55 = vld [vmem:[%s2783_s0 + $0x6] sm:$0x3] }
 0x474   :  { %v2456_v59 = vadd.f32 %v240_v58, %v232_v56 }
 0x475   :  { %2139 = vtanh.f32 %v2454_v57 }
 0x476   :  { %2141 = vtanh.f32 %v2456_v59 }
 0x482   :  { %v2140_v60 = vpop.eup %2139 }
 0x483   :  { %v2142_v61 = vpop.eup %2141  ;;  %344 = vrot.lane.b32.xlu1 %v2140_v60, %s2260_s30 }
 0x484   :  { %245 = vrot.lane.b32.xlu0 %v2142_v61, %s2260_s30 }
 0x4f5   :  { %v345_v62 = vpop.permute.xlu1 %344 }
 0x4f6   :  { %v347_v63 = vmul.f32 %v2136_v48, %v345_v62  ;;  %v246_v5 = vpop.permute.xlu0 %245 }
 0x4f7   :  { %v248_v6 = vmul.f32 %v2138_v50, %v246_v5 }
 0x4f8   :  { %349 = vrot.lane.b32.xlu0 %v347_v63, %s2261_s7 }
 0x4f9   :  { %353 = vrot.lane.b32.xlu1 %v248_v6, %s2260_s30 }
 0x56a   :  { %v350_v7 = vpop.permute.xlu0 %349 }
 0x56b   :  { %v354_v8 = vpop.permute.xlu1 %353  ;;  %1943 = vmatmul.mubr.msk.f32.vlgmr.msra.gmra.mxu1 %vm47_vm1, %v350_v7 }
 0x56c   :  { %v356_v9 = vsel %vm47_vm1, %v350_v7, %v354_v8  ;;  %1946 = vmatpush3.msra.mxu1 %v2354_v19  ;;  %1961 = vmatprep.mubr.msk.f32.mxu1 %vm2259_vm0, %v2258_v0 }
 0x56d   :  { %1932 = vmatmul.mubr.msk.f32.vlgmr.msra.gmra.mxu0 %vm151_vm2, %v356_v9  ;;  %1947 = vmatprep.subr.mxu1 %v2258_v0 }
 0x56e   :  { %1948 = vmatpush3.msra.mxu1 %v2359_v20  ;;  %1965 = vmatpush3.msra.mxu0 %v2302_v1 }
 0x56f   :  { %1949 = vmatprep.subr.mxu1 %v2258_v0  ;;  %1966 = vmatprep.subr.mxu0 %v2258_v0 }
 0x570   :  { %1950 = vmatpush3.msra.mxu1 %v2366_v21  ;;  %1967 = vmatpush3.msra.mxu0 %v2307_v2 }
 0x571   :  { %1951 = vmatprep.subr.mxu1 %v2258_v0  ;;  %1968 = vmatprep.subr.mxu0 %v2258_v0 }
 0x572   :  { %1952 = vmatpush3.msra.mxu1 %v2373_v22  ;;  %1969 = vmatpush3.msra.mxu0 %v2317_v3 }
 0x573   :  { %1953 = vmatprep.subr.mxu1 %v2258_v0  ;;  %1970 = vmatprep.subr.mxu0 %v2258_v0 }
 0x574   :  { %1954 = vmatpush3.msra.mxu1 %v2380_v23  ;;  %1971 = vmatpush3.msra.mxu0 %v2326_v4 }
 0x575   :  { %1955 = vmatprep.subr.mxu1 %v2258_v0  ;;  %1972 = vmatprep.mubr.msk.f32.mxu0 %vm2259_vm0, %v2258_v0 }
 0x576   :  { %1956 = vmatpush3.msra.mxu1 %v2387_v24  ;;  %1975 = vmatprep.subr.mxu0 %v2258_v0 }
 0x577   :  { %1957 = vmatprep.subr.mxu1 %v2258_v0 }
 0x578   :  { %1958 = vmatpush3.msra.mxu1 %v2395_v26 }
 0x579   :  { %1959 = vmatprep.subr.mxu1 %v2258_v0 }
 0x57a   :  { %1960 = vmatpush3.msra.mxu1 %v2404_v27 }
 0x57b   :  { %1994 = vmatprep.subr.mxu1 %v2258_v0 }
 0x62b   :  { %v524_v11 = vpop.f32.mrf.mxu1 }
 0x62c   :  { %v528_v12 = vadd.f32 %v1729_v10, %v524_v11 }
 0x62d   :  { %v426_v13 = vpop.f32.mrf.mxu0  ;;  %v1944_v14 = vpop.f32.mrf.mxu1 }
 0x62e   :  { %2143 = vtanh.f32 %v528_v12  ;;  %v427_v15 = vadd.f32 %v2446_v33, %v426_v13  ;;  %v1731_v25 = vmul.f32 -1.442695, %v528_v12 }
 0x62f   :  { %v1933_v16 = vpop.f32.mrf.mxu0 }
 0x630   :  { %2145 = vtanh.f32 %v427_v15  ;;  %v1728_v28 = vmul.f32 -1.442695, %v427_v15 }
 0x631   :  { %2147 = vpow2.f32 %v1731_v25 }
 0x632   :  { %2149 = vpow2.f32 %v1728_v28 }
 0x63b   :  { %v2144_v17 = vpop.eup %2143 }
 0x63c   :  { %538 = vrot.lane.b32.xlu1 %v2144_v17, %s2260_s30 }
 0x63d   :  { %v2146_v18 = vpop.eup %2145 }
 0x63e   :  { %439 = vrot.lane.b32.xlu0 %v2146_v18, %s2260_s30  ;;  %v2148_v29 = vpop.eup %2147 }
 0x63f   :  { %v2150_v30 = vpop.eup %2149  ;;  %v532_v31 = vadd.f32 1.0, %v2148_v29 }
 0x640   :  { %v433_v32 = vadd.f32 1.0, %v2150_v30 }
 0x641   :  { %2151 = vrcp.f32 %v532_v31 }
 0x642   :  { %2153 = vrcp.f32 %v433_v32 }
 0x64e   :  { %v2152_v34 = vpop.eup %2151 }
 0x64f   :  { %v2154_v37 = vpop.eup %2153  ;;  %v536_v40 = vmul.f32 %v2152_v34, %v2454_v57 }
 0x650   :  { %v437_v43 = vmul.f32 %v2154_v37, %v2456_v59 }
 0x6ae   :  { %v539_v35 = vpop.permute.xlu1 %538 }
 0x6af   :  { %v541_v36 = vmul.f32 %v2152_v34, %v539_v35 }
 0x6b0   :  { %v440_v38 = vpop.permute.xlu0 %439 }
 0x6b1   :  { %543 = vrot.lane.b32.xlu1 %v541_v36, %s2261_s7  ;;  %v442_v39 = vmul.f32 %v2154_v37, %v440_v38 }
 0x6b3   :  { %444 = vrot.lane.b32.xlu0 %v442_v39, %s2261_s7 }
 0x723   :  { %v544_v41 = vpop.permute.xlu1 %543 }
 0x724   :  { %v2504_v42 = vadd.f32 %v544_v41, %v536_v40  ;;  %v1739_v41 = vld [vmem:[%s2783_s0 + $0x8] sm:$0x3] }
 0x725   :  { %v445_v44 = vpop.permute.xlu0 %444 }
 0x726   :  { %2155 = vtanh.f32 %v2504_v42  ;;  %v2508_v45 = vadd.f32 %v445_v44, %v437_v43 }
 0x728   :  { %2157 = vtanh.f32 %v2508_v45 }
 0x733   :  { %v2156_v46 = vpop.eup %2155 }
 0x734   :  { %549 = vrot.lane.b32.xlu1 %v2156_v46, %s2260_s30 }
 0x735   :  { %v2158_v47 = vpop.eup %2157 }
 0x736   :  { %450 = vrot.lane.b32.xlu0 %v2158_v47, %s2260_s30 }
 0x7a6   :  { %v550_v48 = vpop.permute.xlu1 %549 }
 0x7a7   :  { %v552_v49 = vmul.f32 %v2152_v34, %v550_v48 }
 0x7a8   :  { %v451_v50 = vpop.permute.xlu0 %450 }
 0x7a9   :  { %554 = vrot.lane.b32.xlu0 %v552_v49, %s2261_s7  ;;  %v453_v51 = vmul.f32 %v2154_v37, %v451_v50 }
 0x7ab   :  { %558 = vrot.lane.b32.xlu1 %v453_v51, %s2260_s30 }
 0x81b   :  { %v555_v52 = vpop.permute.xlu0 %554 }
 0x81c   :  { %1973 = vmatmul.mubr.msk.f32.vlgmr.msra.gmra.mxu0 %vm47_vm1, %v555_v52 }
 0x81d   :  { %1976 = vmatpush3.msra.mxu0 %v2354_v19  ;;  %1991 = vmatprep.mubr.msk.f32.mxu0 %vm2259_vm0, %v2258_v0  ;;  %v559_v53 = vpop.permute.xlu1 %558 }
 0x81e   :  { %1977 = vmatprep.subr.mxu0 %v2258_v0  ;;  %v561_v54 = vsel %vm47_vm1, %v555_v52, %v559_v53 }
 0x81f   :  { %1978 = vmatpush3.msra.mxu0 %v2359_v20  ;;  %1962 = vmatmul.mubr.msk.f32.vlgmr.msra.gmra.mxu1 %vm151_vm2, %v561_v54 }
 0x820   :  { %1979 = vmatprep.subr.mxu0 %v2258_v0  ;;  %1995 = vmatpush3.msra.mxu1 %v2302_v1 }
 0x821   :  { %1980 = vmatpush3.msra.mxu0 %v2366_v21  ;;  %1996 = vmatprep.subr.mxu1 %v2258_v0 }
 0x822   :  { %1981 = vmatprep.subr.mxu0 %v2258_v0  ;;  %1997 = vmatpush3.msra.mxu1 %v2307_v2 }
 0x823   :  { %1982 = vmatpush3.msra.mxu0 %v2373_v22  ;;  %1998 = vmatprep.subr.mxu1 %v2258_v0 }
 0x824   :  { %1983 = vmatprep.subr.mxu0 %v2258_v0  ;;  %1999 = vmatpush3.msra.mxu1 %v2317_v3 }
 0x825   :  { %1984 = vmatpush3.msra.mxu0 %v2380_v23  ;;  %2000 = vmatprep.subr.mxu1 %v2258_v0 }
 0x826   :  { %1985 = vmatprep.subr.mxu0 %v2258_v0  ;;  %2001 = vmatpush3.msra.mxu1 %v2326_v4 }
 0x827   :  { %1986 = vmatpush3.msra.mxu0 %v2387_v24  ;;  %2002 = vmatprep.mubr.msk.f32.mxu1 %vm2259_vm0, %v2258_v0 }
 0x828   :  { %1987 = vmatprep.subr.mxu0 %v2258_v0  ;;  %2005 = vmatprep.subr.mxu1 %v2258_v0 }
 0x829   :  { %1988 = vmatpush3.msra.mxu0 %v2395_v26 }
 0x82a   :  { %1989 = vmatprep.subr.mxu0 %v2258_v0 }
 0x82b   :  { %1990 = vmatpush3.msra.mxu0 %v2404_v27 }
 0x82c   :  { %2024 = vmatprep.subr.mxu0 %v2258_v0 }
 0x8dc   :  { %v729_v56 = vpop.f32.mrf.mxu0 }
 0x8dd   :  { %v733_v57 = vadd.f32 %v1734_v55, %v729_v56 }
 0x8de   :  { %v1974_v58 = vpop.f32.mrf.mxu0 }
 0x8df   :  { %2159 = vtanh.f32 %v733_v57  ;;  %v631_v59 = vpop.f32.mrf.mxu1  ;;  %v1736_v5 = vmul.f32 -1.442695, %v733_v57 }
 0x8e0   :  { %v632_v60 = vadd.f32 %v2446_v33, %v631_v59 }
 0x8e1   :  { %v1963_v61 = vpop.f32.mrf.mxu1 }
 0x8e2   :  { %2161 = vtanh.f32 %v632_v60  ;;  %v1733_v6 = vmul.f32 -1.442695, %v632_v60 }
 0x8e3   :  { %2163 = vpow2.f32 %v1736_v5 }
 0x8e4   :  { %2165 = vpow2.f32 %v1733_v6 }
 0x8ec   :  { %v2160_v62 = vpop.eup %2159 }
 0x8ed   :  { %743 = vrot.lane.b32.xlu1 %v2160_v62, %s2260_s30 }
 0x8ef   :  { %v2162_v63 = vpop.eup %2161 }
 0x8f0   :  { %644 = vrot.lane.b32.xlu0 %v2162_v63, %s2260_s30  ;;  %v2164_v7 = vpop.eup %2163 }
 0x8f1   :  { %v737_v8 = vadd.f32 1.0, %v2164_v7  ;;  %v2166_v9 = vpop.eup %2165 }
 0x8f2   :  { %v638_v10 = vadd.f32 1.0, %v2166_v9 }
 0x8f3   :  { %2167 = vrcp.f32 %v737_v8 }
 0x8f4   :  { %2169 = vrcp.f32 %v638_v10 }
 0x900   :  { %v2168_v11 = vpop.eup %2167 }
 0x901   :  { %v2170_v14 = vpop.eup %2169  ;;  %v741_v17 = vmul.f32 %v2168_v11, %v2504_v42 }
 0x902   :  { %v642_v28 = vmul.f32 %v2170_v14, %v2508_v45 }
 0x95f   :  { %v744_v12 = vpop.permute.xlu1 %743 }
 0x960   :  { %v746_v13 = vmul.f32 %v2168_v11, %v744_v12 }
 0x962   :  { %748 = vrot.lane.b32.xlu1 %v746_v13, %s2261_s7  ;;  %v645_v15 = vpop.permute.xlu0 %644 }
 0x963   :  { %v647_v16 = vmul.f32 %v2170_v14, %v645_v15 }
 0x965   :  { %649 = vrot.lane.b32.xlu0 %v647_v16, %s2261_s7 }
 0x9d4   :  { %v749_v18 = vpop.permute.xlu1 %748 }
 0x9d5   :  { %v2555_v25 = vadd.f32 %v749_v18, %v741_v17  ;;  %v1744_v18 = vld [vmem:[%s2783_s0 + $0xa] sm:$0x3] }
 0x9d7   :  { %2171 = vtanh.f32 %v2555_v25  ;;  %v650_v29 = vpop.permute.xlu0 %649 }
 0x9d8   :  { %v2559_v30 = vadd.f32 %v650_v29, %v642_v28 }
 0x9da   :  { %2173 = vtanh.f32 %v2559_v30 }
 0x9e4   :  { %v2172_v31 = vpop.eup %2171 }
 0x9e5   :  { %754 = vrot.lane.b32.xlu1 %v2172_v31, %s2260_s30 }
 0x9e7   :  { %v2174_v32 = vpop.eup %2173 }
 0x9e8   :  { %655 = vrot.lane.b32.xlu0 %v2174_v32, %s2260_s30 }
 0xa57   :  { %v755_v34 = vpop.permute.xlu1 %754 }
 0xa58   :  { %v757_v35 = vmul.f32 %v2168_v11, %v755_v34 }
 0xa5a   :  { %759 = vrot.lane.b32.xlu0 %v757_v35, %s2261_s7  ;;  %v656_v36 = vpop.permute.xlu0 %655 }
 0xa5b   :  { %v658_v37 = vmul.f32 %v2170_v14, %v656_v36 }
 0xa5d   :  { %763 = vrot.lane.b32.xlu1 %v658_v37, %s2260_s30 }
 0xacc   :  { %v760_v38 = vpop.permute.xlu0 %759 }
 0xacd   :  { %2003 = vmatmul.mubr.msk.f32.vlgmr.msra.gmra.mxu1 %vm47_vm1, %v760_v38 }
 0xace   :  { %2006 = vmatpush3.msra.mxu1 %v2354_v19  ;;  %2021 = vmatprep.mubr.msk.f32.mxu1 %vm2259_vm0, %v2258_v0 }
 0xacf   :  { %2007 = vmatprep.subr.mxu1 %v2258_v0  ;;  %v764_v39 = vpop.permute.xlu1 %763 }
 0xad0   :  { %2008 = vmatpush3.msra.mxu1 %v2359_v20  ;;  %v766_v40 = vsel %vm47_vm1, %v760_v38, %v764_v39 }
 0xad1   :  { %2009 = vmatprep.subr.mxu1 %v2258_v0  ;;  %1992 = vmatmul.mubr.msk.f32.vlgmr.msra.gmra.mxu0 %vm151_vm2, %v766_v40 }
 0xad2   :  { %2010 = vmatpush3.msra.mxu1 %v2366_v21  ;;  %2025 = vmatpush3.msra.mxu0 %v2302_v1 }
 0xad3   :  { %2011 = vmatprep.subr.mxu1 %v2258_v0  ;;  %2026 = vmatprep.subr.mxu0 %v2258_v0 }
 0xad4   :  { %2012 = vmatpush3.msra.mxu1 %v2373_v22  ;;  %2027 = vmatpush3.msra.mxu0 %v2307_v2 }
 0xad5   :  { %2013 = vmatprep.subr.mxu1 %v2258_v0  ;;  %2028 = vmatprep.subr.mxu0 %v2258_v0 }
 0xad6   :  { %2014 = vmatpush3.msra.mxu1 %v2380_v23  ;;  %2029 = vmatpush3.msra.mxu0 %v2317_v3 }
 0xad7   :  { %2015 = vmatprep.subr.mxu1 %v2258_v0  ;;  %2030 = vmatprep.subr.mxu0 %v2258_v0 }
 0xad8   :  { %2032 = vmatprep.mubr.msk.f32.mxu0 %vm2259_vm0, %v2258_v0  ;;  %2031 = vmatpush3.msra.mxu0 %v2326_v4 }
 0xad9   :  { %2016 = vmatpush3.msra.mxu1 %v2387_v24  ;;  %2035 = vmatprep.subr.mxu0 %v2258_v0 }
 0xada   :  { %2017 = vmatprep.subr.mxu1 %v2258_v0 }
 0xadb   :  { %2018 = vmatpush3.msra.mxu1 %v2395_v26 }
 0xadc   :  { %2019 = vmatprep.subr.mxu1 %v2258_v0 }
 0xadd   :  { %2020 = vmatpush3.msra.mxu1 %v2404_v27 }
 0xade   :  { %2054 = vmatprep.subr.mxu1 %v2258_v0 }
 0xb8d   :  { %v934_v42 = vpop.f32.mrf.mxu1 }
 0xb8e   :  { %v938_v43 = vadd.f32 %v1739_v41, %v934_v42 }
 0xb8f   :  { %v2004_v44 = vpop.f32.mrf.mxu1 }
 0xb90   :  { %2175 = vtanh.f32 %v938_v43  ;;  %v1741_v50 = vmul.f32 -1.442695, %v938_v43 }
 0xb91   :  { %v836_v45 = vpop.f32.mrf.mxu0 }
 0xb92   :  { %v837_v46 = vadd.f32 %v2446_v33, %v836_v45 }
 0xb93   :  { %v1993_v47 = vpop.f32.mrf.mxu0 }
 0xb94   :  { %2177 = vtanh.f32 %v837_v46  ;;  %v1738_v51 = vmul.f32 -1.442695, %v837_v46 }
 0xb95   :  { %2179 = vpow2.f32 %v1741_v50 }
 0xb96   :  { %2181 = vpow2.f32 %v1738_v51 }
 0xb9d   :  { %v2176_v48 = vpop.eup %2175 }
 0xb9e   :  { %948 = vrot.lane.b32.xlu1 %v2176_v48, %s2260_s30 }
 0xba1   :  { %v2178_v49 = vpop.eup %2177 }
 0xba2   :  { %849 = vrot.lane.b32.xlu0 %v2178_v49, %s2260_s30  ;;  %v2180_v52 = vpop.eup %2179 }
 0xba3   :  { %v942_v53 = vadd.f32 1.0, %v2180_v52  ;;  %v2182_v54 = vpop.eup %2181 }
 0xba4   :  { %v843_v55 = vadd.f32 1.0, %v2182_v54 }
 0xba5   :  { %2183 = vrcp.f32 %v942_v53 }
 0xba6   :  { %2185 = vrcp.f32 %v843_v55 }
 0xbb2   :  { %v2184_v56 = vpop.eup %2183 }
 0xbb3   :  { %v2186_v59 = vpop.eup %2185  ;;  %v946_v62 = vmul.f32 %v2184_v56, %v2555_v25 }
 0xbb4   :  { %v847_v6 = vmul.f32 %v2186_v59, %v2559_v30 }
 0xc10   :  { %v949_v57 = vpop.permute.xlu1 %948 }
 0xc11   :  { %v951_v58 = vmul.f32 %v2184_v56, %v949_v57 }
 0xc13   :  { %953 = vrot.lane.b32.xlu1 %v951_v58, %s2261_s7 }
 0xc14   :  { %v850_v60 = vpop.permute.xlu0 %849 }
 0xc15   :  { %v852_v61 = vmul.f32 %v2186_v59, %v850_v60 }
 0xc17   :  { %854 = vrot.lane.b32.xlu0 %v852_v61, %s2261_s7 }
 0xc85   :  { %v954_v63 = vpop.permute.xlu1 %953 }
 0xc86   :  { %v2606_v5 = vadd.f32 %v954_v63, %v946_v62 }
 0xc88   :  { %2187 = vtanh.f32 %v2606_v5 }
 0xc89   :  { %v855_v7 = vpop.permute.xlu0 %854 }
 0xc8a   :  { %v2610_v8 = vadd.f32 %v855_v7, %v847_v6 }
 0xc8c   :  { %2189 = vtanh.f32 %v2610_v8 }
 0xc95   :  { %v2188_v9 = vpop.eup %2187 }
 0xc96   :  { %959 = vrot.lane.b32.xlu1 %v2188_v9, %s2260_s30 }
 0xc99   :  { %v2190_v10 = vpop.eup %2189 }
 0xc9a   :  { %860 = vrot.lane.b32.xlu0 %v2190_v10, %s2260_s30 }
 0xd08   :  { %v960_v11 = vpop.permute.xlu1 %959 }
 0xd09   :  { %v962_v12 = vmul.f32 %v2184_v56, %v960_v11 }
 0xd0b   :  { %964 = vrot.lane.b32.xlu0 %v962_v12, %s2261_s7 }
 0xd0c   :  { %v861_v13 = vpop.permute.xlu0 %860 }
 0xd0d   :  { %v863_v14 = vmul.f32 %v2186_v59, %v861_v13 }
 0xd0f   :  { %968 = vrot.lane.b32.xlu1 %v863_v14, %s2260_s30 }
 0xd7d   :  { %v965_v15 = vpop.permute.xlu0 %964 }
 0xd7e   :  { %2033 = vmatmul.mubr.msk.f32.vlgmr.msra.gmra.mxu0 %vm47_vm1, %v965_v15 }
 0xd7f   :  { %2036 = vmatpush3.msra.mxu0 %v2354_v19  ;;  %2051 = vmatprep.mubr.msk.f32.mxu0 %vm2259_vm0, %v2258_v0 }
 0xd80   :  { %2037 = vmatprep.subr.mxu0 %v2258_v0 }
 0xd81   :  { %2038 = vmatpush3.msra.mxu0 %v2359_v20  ;;  %v969_v16 = vpop.permute.xlu1 %968 }
 0xd82   :  { %2039 = vmatprep.subr.mxu0 %v2258_v0  ;;  %v971_v17 = vsel %vm47_vm1, %v965_v15, %v969_v16 }
 0xd83   :  { %2040 = vmatpush3.msra.mxu0 %v2366_v21  ;;  %2022 = vmatmul.mubr.msk.f32.vlgmr.msra.gmra.mxu1 %vm151_vm2, %v971_v17 }
 0xd84   :  { %2041 = vmatprep.subr.mxu0 %v2258_v0  ;;  %2055 = vmatpush3.msra.mxu1 %v2302_v1 }
 0xd85   :  { %2042 = vmatpush3.msra.mxu0 %v2373_v22  ;;  %2056 = vmatprep.subr.mxu1 %v2258_v0 }
 0xd86   :  { %2043 = vmatprep.subr.mxu0 %v2258_v0  ;;  %2057 = vmatpush3.msra.mxu1 %v2307_v2 }
 0xd87   :  { %2044 = vmatpush3.msra.mxu0 %v2380_v23  ;;  %2058 = vmatprep.subr.mxu1 %v2258_v0 }
 0xd88   :  { %2062 = vmatprep.mubr.msk.f32.mxu1 %vm2259_vm0, %v2258_v0  ;;  %2059 = vmatpush3.msra.mxu1 %v2317_v3 }
 0xd89   :  { %2045 = vmatprep.subr.mxu0 %v2258_v0  ;;  %2060 = vmatprep.subr.mxu1 %v2258_v0 }
 0xd8a   :  { %2046 = vmatpush3.msra.mxu0 %v2387_v24  ;;  %2061 = vmatpush3.msra.mxu1 %v2326_v4 }
 0xd8b   :  { %2047 = vmatprep.subr.mxu0 %v2258_v0  ;;  %2065 = vmatprep.subr.mxu1 %v2258_v0 }
 0xd8c   :  { %2048 = vmatpush3.msra.mxu0 %v2395_v26 }
 0xd8d   :  { %2049 = vmatprep.subr.mxu0 %v2258_v0 }
 0xd8e   :  { %2050 = vmatpush3.msra.mxu0 %v2404_v27 }
 0xd8f   :  { %2084 = vmatprep.subr.mxu0 %v2258_v0 }
 0xe3e   :  { %v1139_v25 = vpop.f32.mrf.mxu0 }
 0xe3f   :  { %v1143_v28 = vadd.f32 %v1744_v18, %v1139_v25 }
 0xe40   :  { %v2034_v29 = vpop.f32.mrf.mxu0 }
 0xe41   :  { %2191 = vtanh.f32 %v1143_v28  ;;  %v1746_v36 = vmul.f32 -1.442695, %v1143_v28 }
 0xe43   :  { %v1041_v30 = vpop.f32.mrf.mxu1 }
 0xe44   :  { %v1042_v31 = vadd.f32 %v2446_v33, %v1041_v30 }
 0xe45   :  { %v2023_v32 = vpop.f32.mrf.mxu1 }
 0xe46   :  { %2193 = vtanh.f32 %v1042_v31  ;;  %v1743_v37 = vmul.f32 -1.442695, %v1042_v31 }
 0xe47   :  { %2195 = vpow2.f32 %v1746_v36 }
 0xe48   :  { %2197 = vpow2.f32 %v1743_v37  ;;  %v2251_v37 = vld [vmem:[%s2784_s2 + $0x38] sm:$0xff] }
 0xe4e   :  { %v2192_v34 = vpop.eup %2191 }
 0xe4f   :  { %1153 = vrot.lane.b32.xlu1 %v2192_v34, %s2260_s30 }
 0xe53   :  { %v2194_v35 = vpop.eup %2193 }
 0xe54   :  { %1054 = vrot.lane.b32.xlu0 %v2194_v35, %s2260_s30  ;;  %v2196_v38 = vpop.eup %2195 }
 0xe55   :  { %v1147_v39 = vadd.f32 1.0, %v2196_v38  ;;  %v2198_v40 = vpop.eup %2197  ;;  %v2252_v38 = vld [vmem:[%s2784_s2 + $0x30] sm:$0xff] }
 0xe56   :  { %v1048_v41 = vadd.f32 1.0, %v2198_v40 }
 0xe57   :  { %2199 = vrcp.f32 %v1147_v39  ;;  %v2253_v39 = vld [vmem:[%s2784_s2 + $0x28] sm:$0xff] }
 0xe58   :  { %2201 = vrcp.f32 %v1048_v41 }
 0xe64   :  { %v2200_v42 = vpop.eup %2199 }
 0xe65   :  { %v2202_v45 = vpop.eup %2201  ;;  %v1151_v48 = vmul.f32 %v2200_v42, %v2606_v5 }
 0xe66   :  { %v1052_v51 = vmul.f32 %v2202_v45, %v2610_v8 }
 0xec1   :  { %v1154_v43 = vpop.permute.xlu1 %1153 }
 0xec2   :  { %v1156_v44 = vmul.f32 %v2200_v42, %v1154_v43  ;;  %v2255_v43 = vld [vmem:[%s2784_s2 + $0x18] sm:$0xff] }
 0xec4   :  { %1158 = vrot.lane.b32.xlu1 %v1156_v44, %s2261_s7  ;;  %v2256_v44 = vld [vmem:[%s2784_s2 + $0x10] sm:$0xff] }
 0xec6   :  { %v1055_v46 = vpop.permute.xlu0 %1054 }
 0xec7   :  { %v1057_v47 = vmul.f32 %v2202_v45, %v1055_v46 }
 0xec9   :  { %1059 = vrot.lane.b32.xlu0 %v1057_v47, %s2261_s7 }
 0xf36   :  { %v1159_v49 = vpop.permute.xlu1 %1158 }
 0xf37   :  { %v2657_v50 = vadd.f32 %v1159_v49, %v1151_v48 }
 0xf39   :  { %2203 = vtanh.f32 %v2657_v50 }
 0xf3b   :  { %v1060_v52 = vpop.permute.xlu0 %1059 }
 0xf3c   :  { %v2661_v53 = vadd.f32 %v1060_v52, %v1052_v51 }
 0xf3e   :  { %2205 = vtanh.f32 %v2661_v53 }
 0xf46   :  { %v2204_v54 = vpop.eup %2203 }
 0xf47   :  { %1164 = vrot.lane.b32.xlu1 %v2204_v54, %s2260_s30 }
 0xf4b   :  { %v2206_v55 = vpop.eup %2205 }
 0xf4c   :  { %1065 = vrot.lane.b32.xlu0 %v2206_v55, %s2260_s30 }
 0xfb9   :  { %v1165_v56 = vpop.permute.xlu1 %1164 }
 0xfba   :  { %v1167_v57 = vmul.f32 %v2200_v42, %v1165_v56  ;;  %v2254_v42 = vld [vmem:[%s2784_s2 + $0x20] sm:$0xff] }
 0xfbc   :  { %1169 = vrot.lane.b32.xlu0 %v1167_v57, %s2261_s7 }
 0xfbe   :  { %v1066_v58 = vpop.permute.xlu0 %1065 }
 0xfbf   :  { %v1068_v59 = vmul.f32 %v2202_v45, %v1066_v58  ;;  %v1754_v45 = vld [vmem:[%s2783_s0 + $0xe] sm:$0x3] }
 0xfc1   :  { %1173 = vrot.lane.b32.xlu1 %v1068_v59, %s2260_s30 }
0x102e   :  { %v1170_v60 = vpop.permute.xlu0 %1169 }
0x102f   :  { %2063 = vmatmul.mubr.msk.f32.vlgmr.msra.gmra.mxu1 %vm47_vm1, %v1170_v60 }
0x1030   :  { %2066 = vmatpush3.msra.mxu1 %v2354_v19  ;;  %2081 = vmatprep.mubr.msk.f32.mxu1 %vm2259_vm0, %v2258_v0 }
0x1031   :  { %2067 = vmatprep.subr.mxu1 %v2258_v0 }
0x1032   :  { %2068 = vmatpush3.msra.mxu1 %v2359_v20 }
0x1033   :  { %2069 = vmatprep.subr.mxu1 %v2258_v0  ;;  %v1174_v61 = vpop.permute.xlu1 %1173 }
0x1034   :  { %2070 = vmatpush3.msra.mxu1 %v2366_v21  ;;  %v1176_v62 = vsel %vm47_vm1, %v1170_v60, %v1174_v61 }
0x1035   :  { %2071 = vmatprep.subr.mxu1 %v2258_v0  ;;  %2052 = vmatmul.mubr.msk.f32.vlgmr.msra.gmra.mxu0 %vm151_vm2, %v1176_v62 }
0x1036   :  { %2072 = vmatpush3.msra.mxu1 %v2373_v22  ;;  %2085 = vmatpush3.msra.mxu0 %v2302_v1  ;;  %v1749_v1 = vld [vmem:[%s2783_s0 + $0xc] sm:$0x3] }
0x1037   :  { %2073 = vmatprep.subr.mxu1 %v2258_v0  ;;  %2086 = vmatprep.subr.mxu0 %v2258_v0 }
0x1038   :  { %2092 = vmatprep.mubr.msk.f32.mxu0 %vm2259_vm0, %v2258_v0  ;;  %2087 = vmatpush3.msra.mxu0 %v2307_v2 }
0x1039   :  { %2074 = vmatpush3.msra.mxu1 %v2380_v23  ;;  %2088 = vmatprep.subr.mxu0 %v2258_v0 }
0x103a   :  { %2075 = vmatprep.subr.mxu1 %v2258_v0  ;;  %2089 = vmatpush3.msra.mxu0 %v2317_v3 }
0x103b   :  { %2076 = vmatpush3.msra.mxu1 %v2387_v24  ;;  %2090 = vmatprep.subr.mxu0 %v2258_v0 }
0x103c   :  { %2077 = vmatprep.subr.mxu1 %v2258_v0  ;;  %2091 = vmatpush3.msra.mxu0 %v2326_v4 }
0x103d   :  { %2078 = vmatpush3.msra.mxu1 %v2395_v26  ;;  %2095 = vmatprep.subr.mxu0 %v2258_v0 }
0x103e   :  { %2079 = vmatprep.subr.mxu1 %v2258_v0 }
0x103f   :  { %2080 = vmatpush3.msra.mxu1 %v2404_v27 }
0x10ef   :  { %v1344_v2 = vpop.f32.mrf.mxu1 }
0x10f0   :  { %v1348_v3 = vadd.f32 %v1749_v1, %v1344_v2 }
0x10f1   :  { %v2064_v19 = vpop.f32.mrf.mxu1 }
0x10f2   :  { %2207 = vtanh.f32 %v1348_v3  ;;  %v1751_v24 = vmul.f32 -1.442695, %v1348_v3 }
0x10f5   :  { %v1246_v20 = vpop.f32.mrf.mxu0 }
0x10f6   :  { %v1247_v21 = vadd.f32 %v2446_v33, %v1246_v20 }
0x10f7   :  { %v2053_v4 = vpop.f32.mrf.mxu0 }
0x10f8   :  { %2209 = vtanh.f32 %v1247_v21  ;;  %v1748_v63 = vmul.f32 -1.442695, %v1247_v21 }
0x10f9   :  { %2211 = vpow2.f32 %v1751_v24 }
0x10fa   :  { %2213 = vpow2.f32 %v1748_v63 }
0x10ff   :  { %v2208_v22 = vpop.eup %2207 }
0x1100   :  { %1358 = vrot.lane.b32.xlu1 %v2208_v22, %s2260_s30 }
0x1105   :  { %v2210_v23 = vpop.eup %2209 }
0x1106   :  { %1259 = vrot.lane.b32.xlu0 %v2210_v23, %s2260_s30  ;;  %v2212_v5 = vpop.eup %2211 }
0x1107   :  { %v1352_v6 = vadd.f32 1.0, %v2212_v5  ;;  %v2214_v7 = vpop.eup %2213 }
0x1108   :  { %v1253_v8 = vadd.f32 1.0, %v2214_v7 }
0x1109   :  { %2215 = vrcp.f32 %v1352_v6 }
0x110a   :  { %2217 = vrcp.f32 %v1253_v8 }
0x1116   :  { %v2216_v9 = vpop.eup %2215 }
0x1117   :  { %v2218_v12 = vpop.eup %2217  ;;  %v1356_v15 = vmul.f32 %v2216_v9, %v2657_v50 }
0x1118   :  { %v1257_v18 = vmul.f32 %v2218_v12, %v2661_v53 }
0x1172   :  { %v1359_v10 = vpop.permute.xlu1 %1358 }
0x1173   :  { %v1361_v11 = vmul.f32 %v2216_v9, %v1359_v10 }
0x1175   :  { %1363 = vrot.lane.b32.xlu1 %v1361_v11, %s2261_s7 }
0x1178   :  { %v1260_v13 = vpop.permute.xlu0 %1259 }
0x1179   :  { %v1262_v14 = vmul.f32 %v2218_v12, %v1260_v13 }
0x117b   :  { %1264 = vrot.lane.b32.xlu0 %v1262_v14, %s2261_s7 }
0x11e7   :  { %v1364_v16 = vpop.permute.xlu1 %1363 }
0x11e8   :  { %v2707_v17 = vadd.f32 %v1364_v16, %v1356_v15 }
0x11ea   :  { %2219 = vtanh.f32 %v2707_v17 }
0x11ed   :  { %v1265_v25 = vpop.permute.xlu0 %1264 }
0x11ee   :  { %v2711_v28 = vadd.f32 %v1265_v25, %v1257_v18  ;;  %v1759_v25 = vld [vmem:[%s2786_s4] ss:$0 sm:$0xff] }
0x11f0   :  { %2221 = vtanh.f32 %v2711_v28 }
0x11f7   :  { %v2220_v29 = vpop.eup %2219 }
0x11f8   :  { %1369 = vrot.lane.b32.xlu1 %v2220_v29, %s2260_s30 }
0x11fd   :  { %v2222_v30 = vpop.eup %2221 }
0x11fe   :  { %1270 = vrot.lane.b32.xlu0 %v2222_v30, %s2260_s30 }
0x126a   :  { %v1370_v31 = vpop.permute.xlu1 %1369 }
0x126b   :  { %v1372_v32 = vmul.f32 %v2216_v9, %v1370_v31  ;;  %v2257_v9 = vld [vmem:[%s2785_s3] ss:$0 sm:$0xff]  ;;  %s2262_s3 = smov 96  }
0x126d   :  { %1374 = vrot.lane.b32.xlu0 %v1372_v32, %s2261_s7  ;;  %v11_v32 = vstv %s2787_s5 }
0x126e   :  { %12 = vst [vmem:[#allocation2] sm:$0x1] %v11_v32 }
0x1270   :  { %v1271_v34 = vpop.permute.xlu0 %1270 }
0x1271   :  { %v1273_v35 = vmul.f32 %v2218_v12, %v1271_v34 }
0x1273   :  { %1378 = vrot.lane.b32.xlu1 %v1273_v35, %s2260_s30 }
0x12df   :  { %v1375_v36 = vpop.permute.xlu0 %1374 }
0x12e0   :  { %2093 = vmatmul.mubr.msk.f32.vlgmr.msra.gmra.mxu0 %vm47_vm1, %v1375_v36 }
0x12e1   :  { %2096 = vmatpush3.msra.mxu0 %v2251_v37  ;;  %2111 = vmatprep.mubr.msk.f32.mxu0 %vm2259_vm0, %v2258_v0 }
0x12e2   :  { %2097 = vmatprep.subr.mxu0 %v2258_v0 }
0x12e3   :  { %2098 = vmatpush3.msra.mxu0 %v2252_v38 }
0x12e4   :  { %2099 = vmatprep.subr.mxu0 %v2258_v0 }
0x12e5   :  { %2100 = vmatpush3.msra.mxu0 %v2253_v39  ;;  %v1379_v40 = vpop.permute.xlu1 %1378 }
0x12e6   :  { %2101 = vmatprep.subr.mxu0 %v2258_v0  ;;  %v1381_v41 = vsel %vm47_vm1, %v1375_v36, %v1379_v40  ;;  %v1760_v40 = vld [vmem:[#allocation2] ss:$0 sm:$0xff] }
0x12e7   :  { %2102 = vmatpush3.msra.mxu0 %v2254_v42  ;;  %2082 = vmatmul.mubr.msk.f32.vlgmr.msra.gmra.mxu1 %vm151_vm2, %v1381_v41 }
0x12e8   :  { %2103 = vmatprep.subr.mxu0 %v2258_v0 }
0x12e9   :  { %2104 = vmatpush3.msra.mxu0 %v2255_v43 }
0x12ea   :  { %2105 = vmatprep.subr.mxu0 %v2258_v0 }
0x12eb   :  { %2106 = vmatpush3.msra.mxu0 %v2256_v44 }
0x12ec   :  { %2107 = vmatprep.subr.mxu0 %v2258_v0 }
0x12ed   :  { %2108 = vmatpush3.msra.mxu0 %v2395_v26 }
0x12ee   :  { %2109 = vmatprep.subr.mxu0 %v2258_v0 }
0x12ef   :  { %2110 = vmatpush3.msra.mxu0 %v2404_v27 }
0x13a0   :  { %v1549_v46 = vpop.f32.mrf.mxu0 }
0x13a1   :  { %v1553_v47 = vadd.f32 %v1754_v45, %v1549_v46 }
0x13a2   :  { %v2094_v48 = vpop.f32.mrf.mxu0 }
0x13a3   :  { %2223 = vtanh.f32 %v1553_v47  ;;  %v1756_v0 = vmul.f32 -1.442695, %v1553_v47 }
0x13a7   :  { %v1451_v49 = vpop.f32.mrf.mxu1 }
0x13a8   :  { %v1452_v50 = vadd.f32 %v2446_v33, %v1451_v49 }
0x13a9   :  { %v2083_v51 = vpop.f32.mrf.mxu1 }
0x13aa   :  { %2225 = vtanh.f32 %v1452_v50  ;;  %v1753_v27 = vmul.f32 -1.442695, %v1452_v50 }
0x13ab   :  { %2227 = vpow2.f32 %v1756_v0 }
0x13ac   :  { %2229 = vpow2.f32 %v1753_v27 }
0x13b0   :  { %v2224_v52 = vpop.eup %2223 }
0x13b1   :  { %1563 = vrot.lane.b32.xlu1 %v2224_v52, %s2260_s30 }
0x13b7   :  { %v2226_v26 = vpop.eup %2225 }
0x13b8   :  { %1464 = vrot.lane.b32.xlu0 %v2226_v26, %s2260_s30  ;;  %v2228_v53 = vpop.eup %2227 }
0x13b9   :  { %v1557_v54 = vadd.f32 1.0, %v2228_v53  ;;  %v2230_v55 = vpop.eup %2229 }
0x13ba   :  { %v1458_v56 = vadd.f32 1.0, %v2230_v55 }
0x13bb   :  { %2231 = vrcp.f32 %v1557_v54 }
0x13bc   :  { %2233 = vrcp.f32 %v1458_v56 }
0x13c8   :  { %v2232_v57 = vpop.eup %2231 }
0x13c9   :  { %v2234_v59 = vpop.eup %2233  ;;  %v1561_v62 = vmul.f32 %v2232_v57, %v2707_v17 }
0x13ca   :  { %v1462_v3 = vmul.f32 %v2234_v59, %v2711_v28 }
0x1423   :  { %v1564_v33 = vpop.permute.xlu1 %1563 }
0x1424   :  { %v1566_v58 = vmul.f32 %v2232_v57, %v1564_v33 }
0x1426   :  { %1568 = vrot.lane.b32.xlu1 %v1566_v58, %s2261_s7 }
0x142a   :  { %v1465_v60 = vpop.permute.xlu0 %1464 }
0x142b   :  { %v1467_v61 = vmul.f32 %v2234_v59, %v1465_v60 }
0x142d   :  { %1469 = vrot.lane.b32.xlu0 %v1467_v61, %s2261_s7 }
0x1498   :  { %v1569_v1 = vpop.permute.xlu1 %1568 }
0x1499   :  { %v1571_v2 = vadd.f32 %v1569_v1, %v1561_v62 }
0x149b   :  { %2235 = vtanh.f32 %v1571_v2 }
0x149f   :  { %v1470_v19 = vpop.permute.xlu0 %1469 }
0x14a0   :  { %v1472_v20 = vadd.f32 %v1470_v19, %v1462_v3 }
0x14a2   :  { %2237 = vtanh.f32 %v1472_v20 }
0x14a8   :  { %v2236_v21 = vpop.eup %2235 }
0x14a9   :  { %1574 = vrot.lane.b32.xlu1 %v2236_v21, %s2260_s30 }
0x14af   :  { %v2238_v4 = vpop.eup %2237 }
0x14b0   :  { %1475 = vrot.lane.b32.xlu0 %v2238_v4, %s2260_s30 }
0x151b   :  { %v1575_v22 = vpop.permute.xlu1 %1574 }
0x151c   :  { %v1577_v23 = vmul.f32 %v2232_v57, %v1575_v22 }
0x151e   :  { %1579 = vrot.lane.b32.xlu0 %v1577_v23, %s2261_s7 }
0x1522   :  { %v1476_v24 = vpop.permute.xlu0 %1475 }
0x1523   :  { %v1478_v63 = vmul.f32 %v2234_v59, %v1476_v24 }
0x1525   :  { %1583 = vrot.lane.b32.xlu1 %v1478_v63, %s2260_s30 }
0x1590   :  { %v1580_v5 = vpop.permute.xlu0 %1579 }
0x1597   :  { %v1584_v6 = vpop.permute.xlu1 %1583 }
0x1598   :  { %v1586_v7 = vsel %vm47_vm1, %v1580_v5, %v1584_v6 }
0x1599   :  { %2112 = vmatmul.mubr.msk.f32.vlgmr.msra.gmra.mxu0 %vm151_vm2, %v1586_v7 }
0x1659   :  { %v1656_v8 = vpop.f32.mrf.mxu0 }
0x165a   :  { %v1657_v10 = vadd.f32 %v2257_v9, %v1656_v8 }
0x165b   :  { %v2113_v11 = vpop.f32.mrf.mxu0 }
0x165c   :  { %2239 = vtanh.f32 %v1657_v10  ;;  %v1758_v13 = vmul.f32 -1.442695, %v1657_v10 }
0x165e   :  { %2241 = vpow2.f32 %v1758_v13 }
0x1669   :  { %v2240_v12 = vpop.eup %2239 }
0x166a   :  { %1669 = vrot.lane.b32.xlu0 %v2240_v12, %s2260_s30 }
0x166b   :  { %v2242_v14 = vpop.eup %2241 }
0x166c   :  { %v1663_v15 = vadd.f32 1.0, %v2242_v14 }
0x166e   :  { %2243 = vrcp.f32 %v1663_v15 }
0x167b   :  { %v2244_v16 = vpop.eup %2243 }
0x167c   :  { %v1667_v28 = vmul.f32 %v2244_v16, %v1472_v20 }
0x16dc   :  { %v1670_v17 = vpop.permute.xlu0 %1669 }
0x16dd   :  { %v1672_v18 = vmul.f32 %v2244_v16, %v1670_v17 }
0x16df   :  { %1674 = vrot.lane.b32.xlu1 %v1672_v18, %s2261_s7 }
0x16e3   :  { %1689 = vrot.lane.b32.xlu1 %v1759_v25, %s2262_s3 }
0x1751   :  { %v1675_v29 = vpop.permute.xlu1 %1674 }
0x1752   :  { %v1677_v30 = vadd.f32 %v1675_v29, %v1667_v28 }
0x1754   :  { %2245 = vtanh.f32 %v1677_v30 }
0x1755   :  { %v1690_v35 = vpop.permute.xlu1 %1689 }
0x1761   :  { %v2246_v31 = vpop.eup %2245 }
0x1762   :  { %1680 = vrot.lane.b32.xlu0 %v2246_v31, %s2260_s30 }
0x17d4   :  { %v1681_v34 = vpop.permute.xlu0 %1680 }
0x17d5   :  { %v1683_v36 = vmul.f32 %v2244_v16, %v1681_v34 }
0x17d7   :  { %v1692_v37 = vmul.f32 %v1690_v35, %v1683_v36 }
0x17d9   :  { %1694 = vrot.lane.b32.xlu0 %v1692_v37, %s2261_s7 }
0x184b   :  { %v1695_v38 = vpop.permute.xlu0 %1694 }
0x184c   :  { %v1698_v39 = vsel %vm1697_vm3, %v1695_v38, 0.0 }
0x184d   :  { %1699 = vadd.xlane.f32.xlu1 %v1698_v39 }
0x18d6   :  { %v1700_v41 = vpop.xlane.xlu1 %1699 }
0x18d7   :  { %v1707_v42 = vadd.f32 %v1760_v40, %v1700_v41 }
0x18d9   :  { %v1761_v43 = vmul.f32 -1.442695, %v1707_v42 }
0x18db   :  { %2247 = vpow2.f32 %v1761_v43 }
0x18e8   :  { %v2248_v44 = vpop.eup %2247 }
0x18e9   :  { %v1711_v45 = vadd.f32 1.0, %v2248_v44 }
0x18eb   :  { %2249 = vrcp.f32 %v1711_v45 }
0x18f8   :  { %v2250_v46 = vpop.eup %2249 }
0x18f9   :  { %1715 = vst.msk [vmem:[%s2788_s6] sm:$0x3] %vm1714_vm4, %v2250_v46 }

</bundles_post_ra>
